<compile_context>
chip_gen: v6e
topology: v6e:2x2x1
jax: 0.10.0
libtpu: 0.0.40
codegen_flags: <defaults>
</compile_context>

<pallas_src>
import functools

import jax
import jax.numpy as jnp
from jax.experimental import pallas as pl
from jax.experimental.pallas import tpu as pltpu


def _layernorm_f32(x, a, b, *, eps, features):
    # PyTorch LayerNorm in the spec: unbiased std (ddof=1), eps added to the std.
    mean = jnp.mean(x, axis=-1, keepdims=True)
    diff = x - mean
    var = jnp.sum(diff * diff, axis=-1, keepdims=True) * jnp.float32(1.0 / (features - 1))
    inv = pl.reciprocal(jnp.sqrt(var) + jnp.float32(eps), approx=False)  # EUP, no vdiv
    return a * (diff * inv) + b


def _decoder_layer_kernel(x_ref, ln_ref, wvfc_ref, w1_ref, w2_ref, o_ref,
                          *, eps, d_model, n_sub, chunk):
    # Packed LN params, rows = [a_attn, b_attn, a_ffn, b_ffn].
    ln = ln_ref[...].astype(jnp.float32)
    a1, b1, a2, b2 = ln[0:1], ln[1:2], ln[2:3], ln[3:4]

    wvfc = wvfc_ref[...]          # bf16 weights, resident in VMEM across the row grid
    w1 = w1_ref[...]
    w2 = w2_ref[...]
    mm_dtype = wvfc.dtype

    # Static sub-chunks of the row tile: caps the live f32 [chunk, d_ff] intermediate and
    # lets the scheduler overlap LN (VPU/XLU/EUP) of one chunk with MXU work of another.
    for c in range(n_sub):
        r0 = c * chunk
        x = x_ref[pl.ds(r0, chunk), :].astype(jnp.float32)

        # ---- MultiHeadAttention, collapsed-seq path (softmax(singleton) == 1) ----
        # W_Q / W_K never influence the output on this path; W_v @ W_fc pre-fused.
        xn = _layernorm_f32(x, a1, b1, eps=eps, features=d_model)
        attn_out = jnp.dot(xn.astype(mm_dtype), wvfc,
                           preferred_element_type=jnp.float32)
        # TODO(synk): training-mode nn.Dropout(p=0.2) omitted; eval-mode forward (identity).
        h1 = x + attn_out                                   # residual 1

        # ---- PoswiseFeedForwardNet ----
        hn = _layernorm_f32(h1, a2, b2, eps=eps, features=d_model)
        hidden = jnp.maximum(
            jnp.dot(hn.astype(mm_dtype), w1, preferred_element_type=jnp.float32), 0.0)
        ff = jnp.dot(hidden.astype(mm_dtype), w2, preferred_element_type=jnp.float32)

        o_ref[pl.ds(r0, chunk), :] = (h1 + ff).astype(o_ref.dtype)   # residual 2


def _round_up(v, m):
    return ((v + m - 1) // m) * m


def decoder_layer(x,
                  attn_norm_a, attn_norm_b, w_q, w_k, w_v, w_fc,
                  ffn_norm_a, ffn_norm_b, w_ff1, w_ff2,
                  *, nheads=8, eps=1e-6, tile_rows=512, sub_chunk_rows=128,
                  matmul_dtype=jnp.bfloat16):
    """
    x:                 [batch, d_model]   (one token per row; see header note)
    attn_norm_*/ffn_*: [d_model]          LayerNorm scale / bias
    w_q/w_k/w_v/w_fc:  nn.Linear weights stored transposed so y = x @ w
    w_ff1: [d_model, d_ff], w_ff2: [d_ff, d_model]
    Returns (dec_outputs [batch, d_model], attn [batch, nheads, 1, 1]).
    """
    del w_q, w_k  # mathematically dead: softmax over a length-1 key axis is 1

    rows, d_model = x.shape
    d_ff = w_ff1.shape[1]
    if d_model % 128 != 0 or d_ff % 128 != 0:
        raise ValueError("d_model and d_ff must be multiples of 128 (lane-dense tiles)")

    # Pre-fuse the attention value/output projections (no nonlinearity in between).
    hp = jax.lax.Precision.HIGHEST
    w_vfc = jnp.dot(w_v.astype(jnp.float32), w_fc.astype(jnp.float32),
                    precision=hp).astype(matmul_dtype)
    w1 = w_ff1.astype(matmul_dtype)
    w2 = w_ff2.astype(matmul_dtype)
    ln = jnp.stack([attn_norm_a, attn_norm_b, ffn_norm_a, ffn_norm_b]
                   ).astype(jnp.float32)                           # (4, d_model)

    # ---- row tiling ------------------------------------------------------------------
    x_itemsize = jnp.dtype(x.dtype).itemsize
    packing = max(1, 4 // x_itemsize)          # f32->1, bf16->2, int8->4
    sub = 8 * packing                          # sublane granularity for x's dtype
    # Big tiles for HBM roofline, but ensure >= 2 grid steps for small batches so
    # dimension_semantics=("parallel",) can shard across both v7x TensorCores.
    half = _round_up(max((rows + 1) // 2, 1), sub) if rows > sub else sub
    tile = max(sub, min(_round_up(tile_rows, sub), half))
    # In-kernel sub-chunk rows (<= sub_chunk_rows, multiple of sublane packing).
    chunk = max(sub, min((sub_chunk_rows // sub) * sub, tile))
    tile = _round_up(tile, chunk)              # tile is a whole number of chunks
    n_sub = tile // chunk
    grid = (pl.cdiv(rows, tile),)              # partial last block OK: rows independent,
                                               # out-of-bounds rows never written back

    kernel = functools.partial(_decoder_layer_kernel, eps=eps, d_model=d_model,
                               n_sub=n_sub, chunk=chunk)

    mm_itemsize = jnp.dtype(matmul_dtype).itemsize
    weight_bytes = (d_model * d_model + 2 * d_model * d_ff) * mm_itemsize + 4 * d_model * 4

    def make_call(single_buffer_resident):
        res_kwargs = (dict(pipeline_mode=pl.Buffered(1))
                      if single_buffer_resident else {})

        def resident(shape):
            # Constant index_map: weights stay in VMEM across the whole row grid.
            return pl.BlockSpec(shape, lambda i: (0, 0), **res_kwargs)

        in_specs = [
            pl.BlockSpec((tile, d_model), lambda i: (i, 0)),       # x row tile
            resident((4, d_model)),                                # packed LN params
            resident((d_model, d_model)),                          # fused W_v @ W_fc
            resident((d_model, d_ff)),                             # W_ff1
            resident((d_ff, d_model)),                             # W_ff2
        ]
        out_spec = pl.BlockSpec((tile, d_model), lambda i: (i, 0))

        # VMEM budget: weights x buffer-count + double-buffered activation tiles
        # + live f32 intermediates, capped below the chip's physical VMEM.
        buf = 1 if single_buffer_resident else 2
        need = (weight_bytes * buf
                + 2 * 2 * tile * d_model * x_itemsize              # in/out, double-buffered
                + chunk * d_ff * 4 + 6 * chunk * d_model * 4       # f32 intermediates
                + (4 << 20))                                       # slack
        try:
            cap = int(pltpu.get_tpu_info().vmem_capacity_bytes)
        except Exception:
            cap = 64 << 20                                         # conservative (v7x per-TC)
        vmem_limit = max(32 << 20, min(int(cap * 0.85), 2 * need))

        return pl.pallas_call(
            kernel,
            out_shape=jax.ShapeDtypeStruct((rows, d_model), x.dtype),
            grid_spec=pl.GridSpec(
                grid=grid,
                in_specs=in_specs,
                out_specs=out_spec,
            ),
            compiler_params=pltpu.CompilerParams(
                dimension_semantics=("parallel",),   # row tiles shard across TCs on v7x
                vmem_limit_bytes=vmem_limit,
            ),
        )(x, ln, w_vfc, w1, w2)

    # TODO(synk): if weights no longer fit VMEM even single-buffered in bf16 (very large
    # d_model/d_ff on v7x), add a second 'arbitrary' grid axis over d_ff and stream
    # W_ff1/W_ff2 tiles into an f32 accumulator instead of keeping them resident.
    try:
        dec_out = make_call(True)          # single-buffer the constant-index weights
    except Exception:
        dec_out = make_call(False)         # fall back to default double-buffering

    # Softmax over a single key position == 1 (dropout identity in eval mode).
    attn = jnp.ones((rows, nheads, 1, 1), dtype=x.dtype)
    return dec_out, attn


if __name__ == "__main__":
    key = jax.random.PRNGKey(0)
    d_model, d_ff, d_k, nheads = 128, 256, 16, 8   # small, lane-dense demo shapes
    eps = 1e-6
    ks = jax.random.split(key, 8)

    # nn.Linear weights stored transposed to (in, out): y = x @ w
    w_q = jax.random.normal(ks[0], (d_model, nheads * d_k), jnp.float32) / jnp.sqrt(d_model)
    w_k = jax.random.normal(ks[1], (d_model, nheads * d_k), jnp.float32) / jnp.sqrt(d_model)
    w_v = jax.random.normal(ks[2], (d_model, nheads * d_k), jnp.float32) / jnp.sqrt(d_model)
    w_fc = jax.random.normal(ks[3], (nheads * d_k, d_model), jnp.float32) / jnp.sqrt(nheads * d_k)
    w_ff1 = jax.random.normal(ks[4], (d_model, d_ff), jnp.float32) / jnp.sqrt(d_model)
    w_ff2 = jax.random.normal(ks[5], (d_ff, d_model), jnp.float32) / jnp.sqrt(d_ff)

    # LayerNorm params exactly as in LayerNorm.__init__: ones / zeros
    a1 = jnp.ones((d_model,), jnp.float32); b1 = jnp.zeros((d_model,), jnp.float32)
    a2 = jnp.ones((d_model,), jnp.float32); b2 = jnp.zeros((d_model,), jnp.float32)

    hp = jax.lax.Precision.HIGHEST
    bf = jnp.bfloat16
    w_vfc_q = jnp.dot(w_v, w_fc, precision=hp).astype(bf)
    w1_q, w2_q = w_ff1.astype(bf), w_ff2.astype(bf)

    def ln_ref(t, a, b):
        mean = jnp.mean(t, axis=-1, keepdims=True)
        std = jnp.sqrt(jnp.sum((t - mean) ** 2, axis=-1, keepdims=True) / (t.shape[-1] - 1))
        return a * (t - mean) / (std + eps) + b

    def ref_bf16(t):   # reference with the same bf16 MXU quantization as the kernel
        xn = ln_ref(t, a1, b1)
        h1 = t + jnp.dot(xn.astype(bf), w_vfc_q, preferred_element_type=jnp.float32)
        hn = ln_ref(h1, a2, b2)
        hid = jnp.maximum(jnp.dot(hn.astype(bf), w1_q, preferred_element_type=jnp.float32), 0.0)
        return h1 + jnp.dot(hid.astype(bf), w2_q, preferred_element_type=jnp.float32)

    def ref_f32(t):    # full-precision reference mirroring the PyTorch forward (eval mode)
        xn = ln_ref(t, a1, b1)
        h1 = t + jnp.dot(jnp.dot(xn, w_v, precision=hp), w_fc, precision=hp)
        hn = ln_ref(h1, a2, b2)
        hid = jnp.maximum(jnp.dot(hn, w_ff1, precision=hp), 0.0)
        return h1 + jnp.dot(hid, w_ff2, precision=hp)

    # batch=16: tiny-batch path (grid of 2 for megacore); batch=384: multi-chunk tile +
    # partial last block.
    for batch, xk in ((16, ks[6]), (384, ks[7])):
        x = jax.random.normal(xk, (batch, d_model), dtype=jnp.float32)
        out, attn = decoder_layer(x, a1, b1, w_q, w_k, w_v, w_fc, a2, b2, w_ff1, w_ff2,
                                  nheads=nheads, eps=eps)
        out = jax.block_until_ready(out)

        assert out.shape == (batch, d_model) and out.dtype == x.dtype
        assert attn.shape == (batch, nheads, 1, 1)
        rq = ref_bf16(x)
        rf = ref_f32(x)
        err_q = float(jnp.max(jnp.abs(out - rq)))
        err_f = float(jnp.max(jnp.abs(out - rf)))
        assert jnp.allclose(out, rq, atol=5e-3, rtol=5e-3), f"bf16-ref max err {err_q}"
        assert jnp.allclose(out, rf, atol=5e-2, rtol=5e-2), f"f32-ref max err {err_f}"

    print("KERNEL_OK")
</pallas_src>

<mosaic_0001>
module attributes {stable_mosaic.version = 11 : i64} {
  func.func @_decoder_layer_kernel(%arg0: i32, %arg1: memref<8x128xf32, #tpu.memory_space<vmem>>, %arg2: memref<4x128xf32, #tpu.memory_space<vmem>>, %arg3: memref<128x128xbf16, #tpu.memory_space<vmem>>, %arg4: memref<128x256xbf16, #tpu.memory_space<vmem>>, %arg5: memref<256x128xbf16, #tpu.memory_space<vmem>>, %arg6: memref<8x128xf32, #tpu.memory_space<vmem>>) attributes {dimension_semantics = [#tpu.dimension_semantics<parallel>], iteration_bounds = array<i64: 2>, scalar_prefetch = 0 : i64, scratch_operands = 0 : i64, tpu.core_type = #tpu.core_type<tc>, window_params = [{transform_indices = @transform_0, window_bounds = array<i64: 8, 128>}, {pipeline_mode = #tpu.pipeline_mode<synchronous>, transform_indices = @transform_1, window_bounds = array<i64: 4, 128>}, {pipeline_mode = #tpu.pipeline_mode<synchronous>, transform_indices = @transform_2, window_bounds = array<i64: 128, 128>}, {pipeline_mode = #tpu.pipeline_mode<synchronous>, transform_indices = @transform_3, window_bounds = array<i64: 128, 256>}, {pipeline_mode = #tpu.pipeline_mode<synchronous>, transform_indices = @transform_4, window_bounds = array<i64: 256, 128>}, {transform_indices = @transform_5, window_bounds = array<i64: 8, 128>}]} {
    %c0 = arith.constant 0 : index
    %c0_0 = arith.constant 0 : index
    %0 = vector.load %arg2[%c0, %c0_0] : memref<4x128xf32, #tpu.memory_space<vmem>>, vector<4x128xf32>
    %1 = vector.extract_strided_slice %0 {offsets = [0, 0], sizes = [1, 128], strides = [1, 1]} : vector<4x128xf32> to vector<1x128xf32>
    %2 = vector.extract_strided_slice %0 {offsets = [1, 0], sizes = [1, 128], strides = [1, 1]} : vector<4x128xf32> to vector<1x128xf32>
    %3 = vector.extract_strided_slice %0 {offsets = [2, 0], sizes = [1, 128], strides = [1, 1]} : vector<4x128xf32> to vector<1x128xf32>
    %4 = vector.extract_strided_slice %0 {offsets = [3, 0], sizes = [1, 128], strides = [1, 1]} : vector<4x128xf32> to vector<1x128xf32>
    %c0_1 = arith.constant 0 : index
    %c0_2 = arith.constant 0 : index
    %5 = vector.load %arg3[%c0_1, %c0_2] : memref<128x128xbf16, #tpu.memory_space<vmem>>, vector<128x128xbf16>
    %c0_3 = arith.constant 0 : index
    %c0_4 = arith.constant 0 : index
    %6 = vector.load %arg4[%c0_3, %c0_4] : memref<128x256xbf16, #tpu.memory_space<vmem>>, vector<128x256xbf16>
    %c0_5 = arith.constant 0 : index
    %c0_6 = arith.constant 0 : index
    %7 = vector.load %arg5[%c0_5, %c0_6] : memref<256x128xbf16, #tpu.memory_space<vmem>>, vector<256x128xbf16>
    %c0_7 = arith.constant 0 : index
    %c0_8 = arith.constant 0 : index
    %8 = vector.load %arg1[%c0_7, %c0_8] : memref<8x128xf32, #tpu.memory_space<vmem>>, vector<8x128xf32>
    %cst = arith.constant dense<0.000000e+00> : vector<8xf32>
    %9 = vector.multi_reduction <add>, %8, %cst [1] : vector<8x128xf32> to vector<8xf32>
    %10 = vector.shape_cast %9 : vector<8xf32> to vector<8x1xf32>
    %cst_9 = arith.constant 1.280000e+02 : f32
    %11 = vector.broadcast %cst_9 : f32 to vector<8x1xf32>
    %12 = arith.divf %10, %11 : vector<8x1xf32>
    %13 = vector.broadcast %12 : vector<8x1xf32> to vector<8x128xf32>
    %14 = arith.subf %8, %13 : vector<8x128xf32>
    %15 = arith.mulf %14, %14 : vector<8x128xf32>
    %cst_10 = arith.constant dense<0.000000e+00> : vector<8xf32>
    %16 = vector.multi_reduction <add>, %15, %cst_10 [1] : vector<8x128xf32> to vector<8xf32>
    %17 = vector.shape_cast %16 : vector<8xf32> to vector<8x1xf32>
    %cst_11 = arith.constant 0.00787401571 : f32
    %18 = vector.broadcast %cst_11 : f32 to vector<8x1xf32>
    %19 = arith.mulf %17, %18 : vector<8x1xf32>
    %20 = math.sqrt %19 : vector<8x1xf32>
    %cst_12 = arith.constant 9.99999997E-7 : f32
    %21 = vector.broadcast %cst_12 : f32 to vector<8x1xf32>
    %22 = arith.addf %20, %21 : vector<8x1xf32>
    %23 = tpu.reciprocal %22 : vector<8x1xf32> -> vector<8x1xf32>
    %24 = vector.broadcast %23 : vector<8x1xf32> to vector<8x128xf32>
    %25 = arith.mulf %14, %24 : vector<8x128xf32>
    %26 = vector.broadcast %1 : vector<1x128xf32> to vector<8x128xf32>
    %27 = arith.mulf %26, %25 : vector<8x128xf32>
    %28 = vector.broadcast %2 : vector<1x128xf32> to vector<8x128xf32>
    %29 = arith.addf %27, %28 : vector<8x128xf32>
    %30 = arith.truncf %29 : vector<8x128xf32> to vector<8x128xbf16>
    %cst_13 = arith.constant dense<0.000000e+00> : vector<8x128xf32>
    %31 = tpu.matmul %30, %5, %cst_13 {dimension_numbers = #tpu.dot_dimension_numbers<[1], [0], [0], [1], [0, 0, 1, 1], [], []>} : vector<8x128xbf16>, vector<128x128xbf16>, vector<8x128xf32> -> vector<8x128xf32>
    %32 = arith.addf %8, %31 : vector<8x128xf32>
    %cst_14 = arith.constant dense<0.000000e+00> : vector<8xf32>
    %33 = vector.multi_reduction <add>, %32, %cst_14 [1] : vector<8x128xf32> to vector<8xf32>
    %34 = vector.shape_cast %33 : vector<8xf32> to vector<8x1xf32>
    %cst_15 = arith.constant 1.280000e+02 : f32
    %35 = vector.broadcast %cst_15 : f32 to vector<8x1xf32>
    %36 = arith.divf %34, %35 : vector<8x1xf32>
    %37 = vector.broadcast %36 : vector<8x1xf32> to vector<8x128xf32>
    %38 = arith.subf %32, %37 : vector<8x128xf32>
    %39 = arith.mulf %38, %38 : vector<8x128xf32>
    %cst_16 = arith.constant dense<0.000000e+00> : vector<8xf32>
    %40 = vector.multi_reduction <add>, %39, %cst_16 [1] : vector<8x128xf32> to vector<8xf32>
    %41 = vector.shape_cast %40 : vector<8xf32> to vector<8x1xf32>
    %cst_17 = arith.constant 0.00787401571 : f32
    %42 = vector.broadcast %cst_17 : f32 to vector<8x1xf32>
    %43 = arith.mulf %41, %42 : vector<8x1xf32>
    %44 = math.sqrt %43 : vector<8x1xf32>
    %cst_18 = arith.constant 9.99999997E-7 : f32
    %45 = vector.broadcast %cst_18 : f32 to vector<8x1xf32>
    %46 = arith.addf %44, %45 : vector<8x1xf32>
    %47 = tpu.reciprocal %46 : vector<8x1xf32> -> vector<8x1xf32>
    %48 = vector.broadcast %47 : vector<8x1xf32> to vector<8x128xf32>
    %49 = arith.mulf %38, %48 : vector<8x128xf32>
    %50 = vector.broadcast %3 : vector<1x128xf32> to vector<8x128xf32>
    %51 = arith.mulf %50, %49 : vector<8x128xf32>
    %52 = vector.broadcast %4 : vector<1x128xf32> to vector<8x128xf32>
    %53 = arith.addf %51, %52 : vector<8x128xf32>
    %54 = arith.truncf %53 : vector<8x128xf32> to vector<8x128xbf16>
    %cst_19 = arith.constant dense<0.000000e+00> : vector<8x256xf32>
    %55 = tpu.matmul %54, %6, %cst_19 {dimension_numbers = #tpu.dot_dimension_numbers<[1], [0], [0], [1], [0, 0, 1, 1], [], []>} : vector<8x128xbf16>, vector<128x256xbf16>, vector<8x256xf32> -> vector<8x256xf32>
    %cst_20 = arith.constant 0.000000e+00 : f32
    %56 = vector.broadcast %cst_20 : f32 to vector<8x256xf32>
    %57 = arith.maximumf %55, %56 : vector<8x256xf32>
    %58 = arith.truncf %57 : vector<8x256xf32> to vector<8x256xbf16>
    %cst_21 = arith.constant dense<0.000000e+00> : vector<8x128xf32>
    %59 = tpu.matmul %58, %7, %cst_21 {dimension_numbers = #tpu.dot_dimension_numbers<[1], [0], [0], [1], [0, 0, 1, 1], [], []>} : vector<8x256xbf16>, vector<256x128xbf16>, vector<8x128xf32> -> vector<8x128xf32>
    %60 = arith.addf %32, %59 : vector<8x128xf32>
    %c0_22 = arith.constant 0 : index
    %c0_23 = arith.constant 0 : index
    %61 = vector.load %arg6[%c0_22, %c0_23] : memref<8x128xf32, #tpu.memory_space<vmem>>, vector<8x128xf32>
    tpu.vector_store %arg6[%c0_22, %c0_23], %60 {strides = array<i32>} : memref<8x128xf32, #tpu.memory_space<vmem>>, vector<8x128xf32>,
    return
  }
  func.func @transform_0(%arg0: i32) -> (i32, i32) {
    %c0_i32 = arith.constant 0 : i32
    %c0_i32_0 = arith.constant 0 : i32
    return %arg0, %c0_i32 : i32, i32
  }
  func.func @transform_1(%arg0: i32) -> (i32, i32) {
    %c0_i32 = arith.constant 0 : i32
    %c0_i32_0 = arith.constant 0 : i32
    %c0_i32_1 = arith.constant 0 : i32
    return %c0_i32, %c0_i32_0 : i32, i32
  }
  func.func @transform_2(%arg0: i32) -> (i32, i32) {
    %c0_i32 = arith.constant 0 : i32
    %c0_i32_0 = arith.constant 0 : i32
    %c0_i32_1 = arith.constant 0 : i32
    return %c0_i32, %c0_i32_0 : i32, i32
  }
  func.func @transform_3(%arg0: i32) -> (i32, i32) {
    %c0_i32 = arith.constant 0 : i32
    %c0_i32_0 = arith.constant 0 : i32
    %c0_i32_1 = arith.constant 0 : i32
    return %c0_i32, %c0_i32_0 : i32, i32
  }
  func.func @transform_4(%arg0: i32) -> (i32, i32) {
    %c0_i32 = arith.constant 0 : i32
    %c0_i32_0 = arith.constant 0 : i32
    %c0_i32_1 = arith.constant 0 : i32
    return %c0_i32, %c0_i32_0 : i32, i32
  }
  func.func @transform_5(%arg0: i32) -> (i32, i32) {
    %c0_i32 = arith.constant 0 : i32
    %c0_i32_0 = arith.constant 0 : i32
    return %arg0, %c0_i32 : i32, i32
  }
}

module attributes {stable_mosaic.version = 11 : i64} {
  func.func @_decoder_layer_kernel(%arg0: i32, %arg1: memref<8x128xf32, #tpu.memory_space<vmem>>, %arg2: memref<4x128xf32, #tpu.memory_space<vmem>>, %arg3: memref<128x128xbf16, #tpu.memory_space<vmem>>, %arg4: memref<128x256xbf16, #tpu.memory_space<vmem>>, %arg5: memref<256x128xbf16, #tpu.memory_space<vmem>>, %arg6: memref<8x128xf32, #tpu.memory_space<vmem>>) attributes {dimension_semantics = [#tpu.dimension_semantics<parallel>], iteration_bounds = array<i64: 2>, scalar_prefetch = 0 : i64, scratch_operands = 0 : i64, tpu.core_type = #tpu.core_type<tc>, window_params = [{transform_indices = @transform_0, window_bounds = array<i64: 8, 128>}, {pipeline_mode = #tpu.pipeline_mode<synchronous>, transform_indices = @transform_1, window_bounds = array<i64: 4, 128>}, {pipeline_mode = #tpu.pipeline_mode<synchronous>, transform_indices = @transform_2, window_bounds = array<i64: 128, 128>}, {pipeline_mode = #tpu.pipeline_mode<synchronous>, transform_indices = @transform_3, window_bounds = array<i64: 128, 256>}, {pipeline_mode = #tpu.pipeline_mode<synchronous>, transform_indices = @transform_4, window_bounds = array<i64: 256, 128>}, {transform_indices = @transform_5, window_bounds = array<i64: 8, 128>}]} {
    %c0 = arith.constant 0 : index
    %c0_0 = arith.constant 0 : index
    %0 = vector.load %arg2[%c0, %c0_0] : memref<4x128xf32, #tpu.memory_space<vmem>>, vector<4x128xf32>
    %1 = vector.extract_strided_slice %0 {offsets = [0, 0], sizes = [1, 128], strides = [1, 1]} : vector<4x128xf32> to vector<1x128xf32>
    %2 = vector.extract_strided_slice %0 {offsets = [1, 0], sizes = [1, 128], strides = [1, 1]} : vector<4x128xf32> to vector<1x128xf32>
    %3 = vector.extract_strided_slice %0 {offsets = [2, 0], sizes = [1, 128], strides = [1, 1]} : vector<4x128xf32> to vector<1x128xf32>
    %4 = vector.extract_strided_slice %0 {offsets = [3, 0], sizes = [1, 128], strides = [1, 1]} : vector<4x128xf32> to vector<1x128xf32>
    %c0_1 = arith.constant 0 : index
    %c0_2 = arith.constant 0 : index
    %5 = vector.load %arg3[%c0_1, %c0_2] : memref<128x128xbf16, #tpu.memory_space<vmem>>, vector<128x128xbf16>
    %c0_3 = arith.constant 0 : index
    %c0_4 = arith.constant 0 : index
    %6 = vector.load %arg4[%c0_3, %c0_4] : memref<128x256xbf16, #tpu.memory_space<vmem>>, vector<128x256xbf16>
    %c0_5 = arith.constant 0 : index
    %c0_6 = arith.constant 0 : index
    %7 = vector.load %arg5[%c0_5, %c0_6] : memref<256x128xbf16, #tpu.memory_space<vmem>>, vector<256x128xbf16>
    %c0_7 = arith.constant 0 : index
    %c0_8 = arith.constant 0 : index
    %8 = vector.load %arg1[%c0_7, %c0_8] : memref<8x128xf32, #tpu.memory_space<vmem>>, vector<8x128xf32>
    %cst = arith.constant dense<0.000000e+00> : vector<8xf32>
    %9 = vector.multi_reduction <add>, %8, %cst [1] : vector<8x128xf32> to vector<8xf32>
    %10 = vector.shape_cast %9 : vector<8xf32> to vector<8x1xf32>
    %cst_9 = arith.constant 1.280000e+02 : f32
    %11 = vector.broadcast %cst_9 : f32 to vector<8x1xf32>
    %12 = arith.divf %10, %11 : vector<8x1xf32>
    %13 = vector.broadcast %12 : vector<8x1xf32> to vector<8x128xf32>
    %14 = arith.subf %8, %13 : vector<8x128xf32>
    %15 = arith.mulf %14, %14 : vector<8x128xf32>
    %cst_10 = arith.constant dense<0.000000e+00> : vector<8xf32>
    %16 = vector.multi_reduction <add>, %15, %cst_10 [1] : vector<8x128xf32> to vector<8xf32>
    %17 = vector.shape_cast %16 : vector<8xf32> to vector<8x1xf32>
    %cst_11 = arith.constant 0.00787401571 : f32
    %18 = vector.broadcast %cst_11 : f32 to vector<8x1xf32>
    %19 = arith.mulf %17, %18 : vector<8x1xf32>
    %20 = math.sqrt %19 : vector<8x1xf32>
    %cst_12 = arith.constant 9.99999997E-7 : f32
    %21 = vector.broadcast %cst_12 : f32 to vector<8x1xf32>
    %22 = arith.addf %20, %21 : vector<8x1xf32>
    %23 = tpu.reciprocal %22 : vector<8x1xf32> -> vector<8x1xf32>
    %24 = vector.broadcast %23 : vector<8x1xf32> to vector<8x128xf32>
    %25 = arith.mulf %14, %24 : vector<8x128xf32>
    %26 = vector.broadcast %1 : vector<1x128xf32> to vector<8x128xf32>
    %27 = arith.mulf %26, %25 : vector<8x128xf32>
    %28 = vector.broadcast %2 : vector<1x128xf32> to vector<8x128xf32>
    %29 = arith.addf %27, %28 : vector<8x128xf32>
    %30 = arith.truncf %29 : vector<8x128xf32> to vector<8x128xbf16>
    %cst_13 = arith.constant dense<0.000000e+00> : vector<8x128xf32>
    %31 = tpu.matmul %30, %5, %cst_13 {dimension_numbers = #tpu.dot_dimension_numbers<[1], [0], [0], [1], [0, 0, 1, 1], [], []>} : vector<8x128xbf16>, vector<128x128xbf16>, vector<8x128xf32> -> vector<8x128xf32>
    %32 = arith.addf %8, %31 : vector<8x128xf32>
    %cst_14 = arith.constant dense<0.000000e+00> : vector<8xf32>
    %33 = vector.multi_reduction <add>, %32, %cst_14 [1] : vector<8x128xf32> to vector<8xf32>
    %34 = vector.shape_cast %33 : vector<8xf32> to vector<8x1xf32>
    %cst_15 = arith.constant 1.280000e+02 : f32
    %35 = vector.broadcast %cst_15 : f32 to vector<8x1xf32>
    %36 = arith.divf %34, %35 : vector<8x1xf32>
    %37 = vector.broadcast %36 : vector<8x1xf32> to vector<8x128xf32>
    %38 = arith.subf %32, %37 : vector<8x128xf32>
    %39 = arith.mulf %38, %38 : vector<8x128xf32>
    %cst_16 = arith.constant dense<0.000000e+00> : vector<8xf32>
    %40 = vector.multi_reduction <add>, %39, %cst_16 [1] : vector<8x128xf32> to vector<8xf32>
    %41 = vector.shape_cast %40 : vector<8xf32> to vector<8x1xf32>
    %cst_17 = arith.constant 0.00787401571 : f32
    %42 = vector.broadcast %cst_17 : f32 to vector<8x1xf32>
    %43 = arith.mulf %41, %42 : vector<8x1xf32>
    %44 = math.sqrt %43 : vector<8x1xf32>
    %cst_18 = arith.constant 9.99999997E-7 : f32
    %45 = vector.broadcast %cst_18 : f32 to vector<8x1xf32>
    %46 = arith.addf %44, %45 : vector<8x1xf32>
    %47 = tpu.reciprocal %46 : vector<8x1xf32> -> vector<8x1xf32>
    %48 = vector.broadcast %47 : vector<8x1xf32> to vector<8x128xf32>
    %49 = arith.mulf %38, %48 : vector<8x128xf32>
    %50 = vector.broadcast %3 : vector<1x128xf32> to vector<8x128xf32>
    %51 = arith.mulf %50, %49 : vector<8x128xf32>
    %52 = vector.broadcast %4 : vector<1x128xf32> to vector<8x128xf32>
    %53 = arith.addf %51, %52 : vector<8x128xf32>
    %54 = arith.truncf %53 : vector<8x128xf32> to vector<8x128xbf16>
    %cst_19 = arith.constant dense<0.000000e+00> : vector<8x256xf32>
    %55 = tpu.matmul %54, %6, %cst_19 {dimension_numbers = #tpu.dot_dimension_numbers<[1], [0], [0], [1], [0, 0, 1, 1], [], []>} : vector<8x128xbf16>, vector<128x256xbf16>, vector<8x256xf32> -> vector<8x256xf32>
    %cst_20 = arith.constant 0.000000e+00 : f32
    %56 = vector.broadcast %cst_20 : f32 to vector<8x256xf32>
    %57 = arith.maximumf %55, %56 : vector<8x256xf32>
    %58 = arith.truncf %57 : vector<8x256xf32> to vector<8x256xbf16>
    %cst_21 = arith.constant dense<0.000000e+00> : vector<8x128xf32>
    %59 = tpu.matmul %58, %7, %cst_21 {dimension_numbers = #tpu.dot_dimension_numbers<[1], [0], [0], [1], [0, 0, 1, 1], [], []>} : vector<8x256xbf16>, vector<256x128xbf16>, vector<8x128xf32> -> vector<8x128xf32>
    %60 = arith.addf %32, %59 : vector<8x128xf32>
    %c0_22 = arith.constant 0 : index
    %c0_23 = arith.constant 0 : index
    %61 = vector.load %arg6[%c0_22, %c0_23] : memref<8x128xf32, #tpu.memory_space<vmem>>, vector<8x128xf32>
    tpu.vector_store %arg6[%c0_22, %c0_23], %60 {strides = array<i32>} : memref<8x128xf32, #tpu.memory_space<vmem>>, vector<8x128xf32>,
    return
  }
  func.func @transform_0(%arg0: i32) -> (i32, i32) {
    %c0_i32 = arith.constant 0 : i32
    %c0_i32_0 = arith.constant 0 : i32
    return %arg0, %c0_i32 : i32, i32
  }
  func.func @transform_1(%arg0: i32) -> (i32, i32) {
    %c0_i32 = arith.constant 0 : i32
    %c0_i32_0 = arith.constant 0 : i32
    %c0_i32_1 = arith.constant 0 : i32
    return %c0_i32, %c0_i32_0 : i32, i32
  }
  func.func @transform_2(%arg0: i32) -> (i32, i32) {
    %c0_i32 = arith.constant 0 : i32
    %c0_i32_0 = arith.constant 0 : i32
    %c0_i32_1 = arith.constant 0 : i32
    return %c0_i32, %c0_i32_0 : i32, i32
  }
  func.func @transform_3(%arg0: i32) -> (i32, i32) {
    %c0_i32 = arith.constant 0 : i32
    %c0_i32_0 = arith.constant 0 : i32
    %c0_i32_1 = arith.constant 0 : i32
    return %c0_i32, %c0_i32_0 : i32, i32
  }
  func.func @transform_4(%arg0: i32) -> (i32, i32) {
    %c0_i32 = arith.constant 0 : i32
    %c0_i32_0 = arith.constant 0 : i32
    %c0_i32_1 = arith.constant 0 : i32
    return %c0_i32, %c0_i32_0 : i32, i32
  }
  func.func @transform_5(%arg0: i32) -> (i32, i32) {
    %c0_i32 = arith.constant 0 : i32
    %c0_i32_0 = arith.constant 0 : i32
    return %arg0, %c0_i32 : i32, i32
  }
}

</mosaic_0001>

<bundles_post_ra>
// kernel: tpu_custom_call.1
= control target key start
LH: loop header
LB: loop body
LE: loop exit
PB: predicated region body
PF: predicated region fallthrough
CT: control target
= control target key end

     0   :  { %10 = vsyncpa [#allocation3], 0  ;;  %s1641_s0 = inlined_call_operand.hbm [shape: f32[16,128], index: 0, kind: input, shape index: {}]   ;;  %s1642_s1 = inlined_call_operand.hbm [shape: f32[4,128], index: 1, kind: input, shape index: {}]   ;;  %s1643_s2 = inlined_call_operand.hbm [shape: bf16[128,128], index: 2, kind: input, shape index: {}]   ;;  %s1644_s3 = inlined_call_operand.hbm [shape: bf16[128,256], index: 3, kind: input, shape index: {}]   ;;  %s1645_s4 = inlined_call_operand.hbm [shape: bf16[256,128], index: 4, kind: input, shape index: {}]   ;;  %s1646_s5 = inlined_call_operand.hbm [shape: f32[16,128], index: 5, kind: output, shape index: {}]  }
   0x1   :  { %12 = vsyncpa [#allocation3 + $0x1], 0 }
   0x2   :  { %13 = vsyncpa [#allocation6], 0 }
   0x3   :  { %14 = vsyncpa [#allocation9], 0 }
   0x4   :  { %15 = vsyncpa [#allocation4], 0 }
   0x5   :  { %17 = vsyncpa [#allocation4 + $0x1], 0  ;;  %s1406_s18 = smov 0   ;;  %s1408_s19 = smov 0  }
   0x6   :  { %s1410_s20 = smov 0   ;;  %s1412_s21 = smov 0  }
   0x7 LB: > { %s1363_s22 = smov [#allocation5]   ;;  %s1427_s24 = sadd.s32 4294967295, %s1361_s21   ;;  %s1361_s21 = sphi %s1412_s21, %s1670_s21   ;;  %s1357_s20 = sphi %s1410_s20, %s1669_s20   ;;  %s1353_s19 = sphi %s1408_s19, %s1668_s19   ;;  %s1349_s18 = sphi %s1406_s18, %s1667_s18  }
   0x8   : > { %s177_s23 = sshll.u32 %s1363_s22, 4  ;;  %p897_p0 = scmp.ge.s32.totalorder %s1361_s21, 1  ;;  %s178_s23 = int_to_ptr.vmem [resolvable:$true] %s177_s23 }
   0x9   : > { %p1647_p1 = scmp.eq.s32.totalorder %s1427_s24, 0  ;;  %p164_p2 = scmp.lt.s32.totalorder %s1361_s21, 3 }
   0xa   : > { %s1364_s26 = smov [#allocation8]   ;;  %s1365_s29 = smov [#allocation7]  }
   0xb   : > { %p1432_p3 = pnand %p897_p0, %p164_p2  ;;  %s200_s27 = sshll.u32 %s1364_s26, 4  ;;  %s1439_s27 = int_to_ptr.vmem [resolvable:$true] %s200_s27 }
   0xc   : > { %s187_s30 = sshll.u32 %s1365_s29, 4  ;;  %s1168_s6 = scalar_lea.vmem %s178_s23, 64  ;;  %s1447_s30 = int_to_ptr.vmem [resolvable:$true] %s187_s30 }
   0xd   : > { %s1651_s25 = scalar_select %p1432_p3, 1, 0 }
   0xe   : > { %p1027_p5 = pneg %p1432_p3  ;;  %p1169_p8 = scmp.ne.s32.totalorder %s178_s23, %s1168_s6 }
   0xf   : > { %p1176_p11 = scmp.lt.s32.totalorder %s178_s23, %s178_s23  ;;  %p1177_p12 = scmp.lt.s32.totalorder %s1168_s6, %s1168_s6 }
  0x10   : > { %p1443_p6 = pnand %p1027_p5, %p1647_p1 }
  0x11   : > { %p1178_p13 = por %p1177_p12, %p1176_p11 }
  0x12   : > { %p1159_p7 = pneg %p1443_p6 }
  0x14   : > { %p1171_p9 = pnand %p1169_p8, %p1159_p7 }
  0x16   : > { %p1172_p10 = pneg %p1171_p9 }
  0x18   : > { %p1179_p0 = pnand %p1178_p13, %p1172_p10 }
  0x1a   : > { %1182 = shalt.err (!%p1179_p0)
}
  0x1b   : > { %1030 = dma.hbm_to_vmem [thread:$0]  (!%p1443_p6), %s1642_s1, 64, %s178_s23, [#allocation6]  }
  0x1c   : > { %s1194_s9 = scalar_lea.vmem %s1439_s27, 2048  ;;  %p1202_p9 = scmp.lt.s32.totalorder %s1439_s27, %s1439_s27 }
  0x1d   : > { %p1195_p2 = scmp.ne.s32.totalorder %s1439_s27, %s1194_s9  ;;  %p1203_p10 = scmp.lt.s32.totalorder %s1194_s9, %s1194_s9 }
  0x1f   : > { %p1197_p5 = pnand %p1195_p2, %p1159_p7  ;;  %p1204_p11 = por %p1203_p10, %p1202_p9 }
  0x21   : > { %p1198_p8 = pneg %p1197_p5 }
  0x23   : > { %p1205_p12 = pnand %p1204_p11, %p1198_p8 }
  0x25   : > { %1208 = shalt.err (!%p1205_p12)
}
  0x26   : > { %s1366_s10 = smov 128   ;;  %s1367_s11 = smov 8  }
  0x27   : > { %1036 = dma.hbm_to_vmem [thread:$0]  (!%p1443_p6), %s1644_s3, 2048, %s1439_s27, [#allocation9], %s1366_s10, %s1366_s10, %s1367_s11  }
  0x28   : > { %s1220_s14 = scalar_lea.vmem %s1447_s30, 1024  ;;  %p1228_p5 = scmp.lt.s32.totalorder %s1447_s30, %s1447_s30 }
  0x29   : > { %p1221_p13 = scmp.ne.s32.totalorder %s1447_s30, %s1220_s14  ;;  %p1229_p8 = scmp.lt.s32.totalorder %s1220_s14, %s1220_s14 }
  0x2b   : > { %p1223_p0 = pnand %p1221_p13, %p1159_p7  ;;  %p1230_p9 = por %p1229_p8, %p1228_p5 }
  0x2d   : > { %p1224_p2 = pneg %p1223_p0 }
  0x2f   : > { %p1231_p10 = pnand %p1230_p9, %p1224_p2 }
  0x31   : > { %1234 = shalt.err (!%p1231_p10)
}
  0x32   : > { %s1368_s15 = smov 64   ;;  %s1369_s16 = smov 4  }
  0x33   : > { %1033 = dma.hbm_to_vmem [thread:$0]  (!%p1443_p6), %s1643_s2, 1024, %s1447_s30, [#allocation6], %s1368_s15, %s1368_s15, %s1369_s16  }
  0x34   : > { %s1370_s23 = smov [#allocation10]  }
  0x35   : > { %s213_s26 = sshll.u32 %s1370_s23, 4  ;;  %s214_s26 = int_to_ptr.vmem [resolvable:$true] %s213_s26 }
  0x36   : > { %s1246_s27 = scalar_lea.vmem %s214_s26, 2048  ;;  %p1254_p0 = scmp.lt.s32.totalorder %s214_s26, %s214_s26 }
  0x37   : > { %p1247_p11 = scmp.ne.s32.totalorder %s214_s26, %s1246_s27  ;;  %p1255_p2 = scmp.lt.s32.totalorder %s1246_s27, %s1246_s27 }
  0x39   : > { %p1249_p12 = pnand %p1247_p11, %p1159_p7  ;;  %p1256_p5 = por %p1255_p2, %p1254_p0 }
  0x3b   : > { %p1250_p13 = pneg %p1249_p12 }
  0x3d   : > { %p1257_p8 = pnand %p1256_p5, %p1250_p13 }
  0x3f   : > { %1260 = shalt.err (!%p1257_p8)
}
  0x40   : > { %1039 = dma.hbm_to_vmem [thread:$0]  (!%p1443_p6), %s1645_s4, 2048, %s214_s26, [#allocation9], %s1368_s15, %s1368_s15, %s1369_s16  }
  0x41   : > { %s896_s30 = sadd.s32 4294967294, %s1361_s21   ;;  %s1495_s28 = sadd.s32 1, %s1361_s21  }
  0x42   : > { %s27_s7 = ssub.s32 %s1361_s21, %s1495_s28  ;;  %s30_s8 = sadd.s32 1, %s1357_s20 }
  0x43   : > { %p28_p7 = scmp.eq.s32.totalorder %s27_s7, 0  ;;  %p37_p9 = scmp.ne.s32.totalorder %s1357_s20, %s1353_s19 }
  0x44   : > { %p38_p10 = scmp.eq.s32.totalorder %s1361_s21, 0  ;;  %p43_p11 = scmp.ne.s32.totalorder %s1353_s19, %s1349_s18 }
  0x45   : > { %s1506_s9 = scalar_select %p28_p7, %s1357_s20, %s30_s8  }
  0x46   : > { %p1508_p12 = por %p38_p10, %p37_p9  ;;  %p1514_p6 = por %p1647_p1, %p43_p11 }
  0x47   : > { %p151_p13 = scmp.eq.s32.totalorder %s1427_s24, 1  ;;  %p157_p0 = scmp.eq.s32.totalorder %s896_s30, 1 }
  0x48   : > { %s1654_s11 = scalar_select %p1514_p6, 1, 0 }
  0x49   : > { %p1052_p2 = scmp.lt.s32.totalorder %s1361_s21, 2  ;;  %s227_s12 = sand.u32 1, %s1357_s20  }
  0x4a   : > { %p1521_p5 = por %p151_p13, %p37_p9  ;;  %p1525_p8 = por %p157_p0, %p43_p11 }
  0x4b   : > { %s903_s15 = sshll.u32 %s227_s12, 3  ;;  %s904_s16 = sshll.u32 %s1361_s21, 7 }
  0x4c   : > { %s1655_s13 = scalar_select %p1521_p5, 1, 0 }
  0x4d   : > { %s1656_s14 = scalar_select %p1525_p8, 1, 0 }
  0x4e   : > { %s1533_s23 = scalar_lea.hbm %s1641_s0, %s904_s16  ;;  %s231_s26 = scalar_lea.vmem [#allocation2], %s903_s15 }
  0x4f   : > { %s238_s27 = sshll.u32 %s231_s26, 4  ;;  %p1537_p7 = pnand %p1052_p2, %p1508_p12  ;;  %s239_s27 = int_to_ptr.vmem [resolvable:$true] %s238_s27 }
  0x50   : > { %s228_s6 = scalar_lea.sflag [#allocation3], %s227_s12  ;;  %s1261_s30 = scalar_lea.hbm %s1533_s23, 128 }
  0x51   : > { %p1262_p9 = scmp.ne.s32.totalorder %s1533_s23, %s1261_s30  ;;  %p1263_p10 = pneg %p1537_p7 }
  0x52   : > { %s1266_s16 = scalar_lea.hbm %s1641_s0, 256  ;;  %p1267_p0 = scmp.lt.s32.totalorder %s1533_s23, %s1641_s0 }
  0x53   : > { %p1264_p11 = pnand %p1263_p10, %p1262_p9  ;;  %p1268_p12 = scmp.lt.s32.totalorder %s1266_s16, %s1261_s30 }
  0x55   : > { %p1265_p13 = pneg %p1264_p11  ;;  %p1269_p2 = por %p1268_p12, %p1267_p0 }
  0x57   : > { %p1270_p4 = pnand %p1269_p2, %p1265_p13 }
  0x59   : > { %1273 = shalt.err (!%p1270_p4)
}
  0x5a   : > { %s1274_s10 = scalar_lea.vmem %s239_s27, 128  ;;  %s1371_s12 = smov [#allocation2]  }
  0x5b   : > { %p1275_p1 = scmp.ne.s32.totalorder %s239_s27, %s1274_s10  ;;  %s1279_s22 = sshll.u32 %s1371_s12, 4  ;;  %s1280_s22 = int_to_ptr.vmem [resolvable:$false] %s1279_s22 }
  0x5c   : > { %s1281_s26 = scalar_lea.vmem %s1280_s22, 256  ;;  %p1282_p9 = scmp.lt.s32.totalorder %s239_s27, %s1280_s22 }
  0x5d   : > { %p1277_p8 = pnand %p1275_p1, %p1263_p10  ;;  %p1283_p11 = scmp.lt.s32.totalorder %s1281_s26, %s1274_s10 }
  0x5f   : > { %p1278_p5 = pneg %p1277_p8  ;;  %p1284_p6 = por %p1283_p11, %p1282_p9 }
  0x61   : > { %p1285_p3 = pnand %p1284_p6, %p1278_p5 }
  0x63   : > { %1288 = shalt.err (!%p1285_p3)
}
  0x64   : > { %1043 = dma.hbm_to_vmem [thread:$0]  (!%p1537_p7), %s1533_s23, 128, %s239_s27, %s228_s6  }
  0x65   : > { %p1658_p13 = scmp.ne.s32.totalorder %s1651_s25, 0 }
  0x66   : > { %s1558_s30 = sand.u32 (!%p1658_p13), 1, %s1353_s19   ;;  %p1659_p1 = scmp.ne.s32.totalorder (!%p1658_p13), %s1654_s11, 0 }
  0x67   : > { %247 = sbr.rel (%p1658_p13) target bundleno = 1375 (0x55f), region = 40  ;;  %s906_s7 = sshll.u32 (!%p1658_p13), %s1558_s30, 3 }
  0x68   : > { %s250_s8 = scalar_lea.sflag (!%p1658_p13), [#allocation3], %s1558_s30  ;;  %s253_s16 = scalar_lea.vmem (!%p1658_p13), [#allocation2], %s906_s7 }
  0x6c   : > { %1332 = dma.done.wait (%p1659_p1), %s250_s8, 128  }
  0x6d   : > { %1334 = vsyncadd (%p1659_p1), %s250_s8, 4294967168  ;;  %p1660_p3 = scmp.eq.s32.totalorder %s1427_s24, 0 }
  0x6f   : > { %1336 = dma.done.wait (%p1660_p3), [#allocation6], 1088   ;;  %p1661_p4 = pmov %p1660_p3 }
  0x70   : > { %p1662_p6 = pmov %p1660_p3 }
  0x71   : > { %1338 = vsyncadd (%p1661_p4), [#allocation6], 4294966208 }
  0x72   : > { %1340 = dma.done.wait (%p1662_p6), [#allocation9], 4096   ;;  %p1663_p5 = pmov %p1660_p3 }
  0x73   : > { %v362_v0 = vld [vmem:[%s253_s16] sm:$0xff]  ;;  %v1372_v6 = vmov 0.0   ;;  %v1104_v9 = vld [vmem:[#allocation7 + $0x20] sm:$0xff]   ;;  %vm1373_vm0 = vmmov 0   ;;  %v382_v22 = vlaneseq  ;;  %v1579_v25 = vld [vmem:[#allocation5] sm:$0xf] }
  0x74   : > { %1342 = vsyncadd (%p1663_p5), [#allocation9], 4294963200  ;;  %363 = vadd.xlane.f32.xlu0 %v362_v0  ;;  %v1101_v5 = vld [vmem:[#allocation7 + $0x38] sm:$0xff]   ;;  %987 = vmatprep.subr.bf16.mxu0 %v1372_v6  ;;  %v1102_v7 = vld [vmem:[#allocation7 + $0x30] sm:$0xff]   ;;  %v1374_v54 = vmov 0   ;;  %s953_s25 = sshll.u32 %s1427_s24, 7 }
  0x75   : > { %988 = vmatpush3.bf16.msra.mxu0 %v1101_v5  ;;  %v1103_v8 = vld [vmem:[#allocation7 + $0x28] sm:$0xff]   ;;  %1003 = vmatprep.mubr.msk.bf16.mxu0 %vm1373_vm0, %v1372_v6  ;;  %v1105_v10 = vld [vmem:[#allocation7 + $0x18] sm:$0xff]   ;;  %v1106_v11 = vld [vmem:[#allocation7 + $0x10] sm:$0xff]   ;;  %v1576_v23 = vshrl.u32 %v382_v22, 7  ;;  %s295_s11 = scalar_lea.vmem [#allocation11], %s906_s7  ;;  %s1604_s6 = scalar_lea.hbm %s1646_s5, %s953_s25 }
  0x76   : > { %989 = vmatprep.subr.bf16.mxu0 %v1372_v6  ;;  %v1107_v12 = vld [vmem:[#allocation7 + $0x8] sm:$0xff]   ;;  %v1108_v13 = vld [vmem:[#allocation7] sm:$0xff]   ;;  %v1109_v43 = vld [vmem:[#allocation8 + $0x74] ss:$8 sps:$4 sm:$0xff]   ;;  %623 = vmatprep.mubr.bf16.mxu1 %v1374_v54  ;;  %s788_s23 = sshll.u32 %s295_s11, 4  ;;  %s775_s15 = scalar_lea.sflag [#allocation4], %s1558_s30  ;;  %s789_s23 = int_to_ptr.vmem [resolvable:$true] %s788_s23 }
  0x77   : > { %v384_v24 = vsub.s32 0, %v1576_v23  ;;  %v389_v26 = vsub.s32 1, %v1576_v23  ;;  %v1111_v44 = vld [vmem:[#allocation8 + $0x70] ss:$8 sps:$4 sm:$0xff]   ;;  %591 = vmatprep.subr.bf16.mxu1 %v1109_v43  ;;  %v1112_v45 = vld [vmem:[#allocation8 + $0x64] ss:$8 sps:$4 sm:$0xff]  }
  0x78   : > { %592 = vmatpush1.bf16.msra.mxu1 %v1111_v44  ;;  %v1114_v46 = vld [vmem:[#allocation8 + $0x60] ss:$8 sps:$4 sm:$0xff]   ;;  %v1115_v47 = vld [vmem:[#allocation8 + $0x54] ss:$8 sps:$4 sm:$0xff]   ;;  %v1117_v48 = vld [vmem:[#allocation8 + $0x50] ss:$8 sps:$4 sm:$0xff]  }
  0x79   : > { %990 = vmatpush3.bf16.msra.mxu0 %v1102_v7  ;;  %v385_v27 = vrot.slane %v1579_v25, %v384_v24  ;;  %v390_v30 = vrot.slane %v1579_v25, %v389_v26  ;;  %593 = vmatprep.subr.bf16.mxu1 %v1112_v45  ;;  %v1118_v49 = vld [vmem:[#allocation8 + $0x44] ss:$8 sps:$4 sm:$0xff]   ;;  %v1120_v50 = vld [vmem:[#allocation8 + $0x40] ss:$8 sps:$4 sm:$0xff]   ;;  %v1121_v51 = vld [vmem:[#allocation8 + $0x34] ss:$8 sps:$4 sm:$0xff]  }
  0x7a   : > { %991 = vmatprep.subr.bf16.mxu0 %v1372_v6  ;;  %v1123_v52 = vld [vmem:[#allocation8 + $0x30] ss:$8 sps:$4 sm:$0xff]   ;;  %v1124_v53 = vld [vmem:[#allocation8 + $0x24] ss:$8 sps:$4 sm:$0xff]   ;;  %v1126_v55 = vld [vmem:[#allocation8 + $0x20] ss:$8 sps:$4 sm:$0xff]  }
  0x7b   : > { %v1127_v56 = vld [vmem:[#allocation8 + $0x14] ss:$8 sps:$4 sm:$0xff]   ;;  %v1129_v57 = vld [vmem:[#allocation8 + $0x10] ss:$8 sps:$4 sm:$0xff]   ;;  %v1130_v58 = vld [vmem:[#allocation8 + $0x4] ss:$8 sps:$4 sm:$0xff]  }
  0x7c   : > { %594 = vmatpush1.bf16.msra.mxu1 %v1114_v46  ;;  %v1132_v59 = vld [vmem:[#allocation8] ss:$8 sps:$4 sm:$0xff]   ;;  %v1133_v60 = vld [vmem:[#allocation10 + $0x78] sm:$0xff]   ;;  %v1135_v62 = vld [vmem:[#allocation10 + $0x70] sm:$0xff]   ;;  %s1289_s17 = scalar_lea.vmem %s789_s23, 128  ;;  %p1664_p7 = scmp.ne.s32.totalorder %s1655_s13, 0 }
  0x7d   : > { %992 = vmatpush3.bf16.msra.mxu0 %v1103_v8  ;;  %595 = vmatprep.subr.bf16.mxu1 %v1115_v47  ;;  %v1134_v61 = vld [vmem:[#allocation10 + $0x38] sm:$0xff]   ;;  %v1136_v63 = vld [vmem:[#allocation10 + $0x30] sm:$0xff]   ;;  %p1290_p8 = scmp.ne.s32.totalorder %s789_s23, %s1289_s17  ;;  %s1375_s24 = smov [#allocation11]  }
  0x7e   : > { %993 = vmatprep.subr.bf16.mxu0 %v1372_v6  ;;  %v1142_v5 = vld [vmem:[#allocation10 + $0x18] sm:$0xff]   ;;  %v1144_v7 = vld [vmem:[#allocation10 + $0x10] sm:$0xff]   ;;  %s1293_s10 = sshll.u32 %s1375_s24, 4  ;;  %s1294_s10 = int_to_ptr.vmem [resolvable:$false] %s1293_s10 }
  0x7f   : > { %p1291_p10 = pnand %p1290_p8, %p1664_p7  ;;  %s1295_s12 = scalar_lea.vmem %s1294_s10, 256 }
  0x80   : > { %596 = vmatpush1.bf16.msra.mxu1 %v1117_v48  ;;  %p1296_p12 = scmp.lt.s32.totalorder %s789_s23, %s1294_s10  ;;  %p1297_p2 = scmp.lt.s32.totalorder %s1295_s12, %s1289_s17 }
  0x81   : > { %994 = vmatpush3.bf16.msra.mxu0 %v1104_v9  ;;  %597 = vmatprep.subr.bf16.mxu1 %v1118_v49  ;;  %p1292_p0 = pneg %p1291_p10 }
  0x82   : > { %995 = vmatprep.subr.bf16.mxu0 %v1372_v6  ;;  %p1298_p9 = por %p1297_p2, %p1296_p12 }
  0x84   : > { %598 = vmatpush1.bf16.msra.mxu1 %v1120_v50  ;;  %p1299_p11 = pnand %p1298_p9, %p1292_p0 }
  0x85   : > { %996 = vmatpush3.bf16.msra.mxu0 %v1105_v10  ;;  %599 = vmatprep.subr.bf16.mxu1 %v1121_v51 }
  0x86   : > { %997 = vmatprep.subr.bf16.mxu0 %v1372_v6 }
  0x88   : > { %600 = vmatpush1.bf16.msra.mxu1 %v1123_v52 }
  0x89   : > { %998 = vmatpush3.bf16.msra.mxu0 %v1106_v11  ;;  %601 = vmatprep.subr.bf16.mxu1 %v1124_v53 }
  0x8a   : > { %999 = vmatprep.subr.bf16.mxu0 %v1372_v6 }
  0x8c   : > { %602 = vmatpush1.bf16.msra.mxu1 %v1126_v55 }
  0x8d   : > { %1000 = vmatpush3.bf16.msra.mxu0 %v1107_v12  ;;  %603 = vmatprep.subr.bf16.mxu1 %v1127_v56 }
  0x8e   : > { %1001 = vmatprep.subr.bf16.mxu0 %v1372_v6  ;;  %v1143_v6 = vld [vmem:[#allocation10 + $0x50] sm:$0xff]  }
  0x90   : > { %604 = vmatpush1.bf16.msra.mxu1 %v1129_v57 }
  0x91   : > { %1002 = vmatpush3.bf16.msra.mxu0 %v1108_v13  ;;  %605 = vmatprep.subr.bf16.mxu1 %v1130_v58 }
  0x92   : > { %965 = vmatprep.subr.bf16.mxu0 %v1133_v60 }
  0x94   : > { %606 = vmatpush1.bf16.msra.mxu1 %v1132_v59 }
  0xfd   : > { %v364_v1 = vpop.xlane.xlu0 %363 }
  0xfe   : > { %v366_v2 = vmul.f32 0.0078125, %v364_v1  ;;  %v1138_v1 = vld [vmem:[#allocation10 + $0x28] sm:$0xff]  }
 0x100   : > { %v367_v3 = vsub.f32 %v362_v0, %v366_v2  ;;  %v1139_v2 = vld [vmem:[#allocation10 + $0x60] sm:$0xff]  }
 0x102   : > { %v368_v4 = vmul.f32 %v367_v3, %v367_v3 }
 0x104   : > { %369 = vadd.xlane.f32.xlu0 %v368_v4  ;;  %v1141_v4 = vld [vmem:[#allocation10 + $0x58] sm:$0xff]  }
 0x18d   : > { %v370_v14 = vpop.xlane.xlu0 %369 }
 0x18e   : > { %v371_v15 = vmul.f32 0.007874016, %v370_v14 }
 0x190   : > { %1149 = vrsqrt.f32 %v371_v15  ;;  %vm374_vm1 = vcmp.eq.f32.partialorder %v371_v15, inf  ;;  %v377_v18 = vand.u32 2147483648, %v371_v15  ;;  %vm376_vm2 = vcmp.eq.f32.partialorder %v371_v15, 0.0 }
 0x19d   : > { %v1150_v16 = vpop.eup %1149 }
 0x19e   : > { %v373_v17 = vmul.f32 %v1150_v16, %v371_v15  ;;  %v502_v16 = vsub.s32 2, %v1576_v23 }
 0x1a0   : > { %v375_v19 = vsel %vm374_vm1, %v371_v15, %v373_v17  ;;  %v507_v17 = vsub.s32 3, %v1576_v23 }
 0x1a1   : > { %v378_v20 = vsel %vm376_vm2, %v377_v18, %v375_v19  ;;  %v503_v18 = vrot.slane %v1579_v25, %v502_v16 }
 0x1a2   : > { %v379_v21 = vadd.f32 1e-06, %v378_v20 }
 0x1a4   : > { %1151 = vrcp.f32 %v379_v21  ;;  %v508_v21 = vrot.slane %v1579_v25, %v507_v17 }
 0x1b1   : > { %v1152_v28 = vpop.eup %1151 }
 0x1b2   : > { %v381_v29 = vmul.f32 %v1152_v28, %v367_v3  ;;  %v1140_v3 = vld [vmem:[#allocation10 + $0x20] sm:$0xff]   ;;  %v1146_v28 = vld [vmem:[#allocation10 + $0x8] sm:$0xff]  }
 0x1b4   : > { %v386_v31 = vmul.f32 %v385_v27, %v381_v29  ;;  %v1145_v27 = vld [vmem:[#allocation10 + $0x48] sm:$0xff]   ;;  %v1147_v29 = vld [vmem:[#allocation10 + $0x40] sm:$0xff]  }
 0x1b6   : > { %v391_v32 = vadd.f32 %v390_v30, %v386_v31  ;;  %v1148_v30 = vld [vmem:[#allocation10] sm:$0xff]  }
 0x1b8   : > { %v392_v33 = vpack.c.bf16 %v391_v32, %v391_v32 }
 0x1ba   : > { %1004 = vmatmul.mubr.bf16.vlgmr.msra.gmra.mxu0 %v392_v33 }
 0x1bb   : > { %966 = vmatpush3.bf16.msra.mxu0 %v1134_v61 }
 0x1bc   : > { %967 = vmatprep.subr.bf16.mxu0 %v1135_v62 }
 0x1bf   : > { %968 = vmatpush3.bf16.msra.mxu0 %v1136_v63 }
 0x27a   : > { %v475_v34 = vpop.f32.mrf.mxu0 }
 0x27b   : > { %v1584_v35 = vadd.f32 %v475_v34, %v362_v0  ;;  %v1137_v0 = vld [vmem:[#allocation10 + $0x68] sm:$0xff]  }
 0x27c   : > { %v1005_v36 = vpop.f32.mrf.mxu0  ;;  %969 = vmatprep.subr.bf16.mxu0 %v1137_v0 }
 0x27d   : > { %482 = vadd.xlane.f32.xlu1 %v1584_v35  ;;  %970 = vmatpush3.bf16.msra.mxu0 %v1138_v1 }
 0x27e   : > { %v478_v37 = vpop.f32.mrf.mxu0  ;;  %971 = vmatprep.subr.bf16.mxu0 %v1139_v2 }
 0x280   : > { %v1006_v38 = vpop.f32.mrf.mxu0 }
 0x281   : > { %972 = vmatpush3.bf16.msra.mxu0 %v1140_v3 }
 0x282   : > { %973 = vmatprep.subr.bf16.mxu0 %v1141_v4 }
 0x285   : > { %974 = vmatpush3.bf16.msra.mxu0 %v1142_v5 }
 0x286   : > { %975 = vmatprep.subr.bf16.mxu0 %v1143_v6 }
 0x289   : > { %976 = vmatpush3.bf16.msra.mxu0 %v1144_v7 }
 0x28a   : > { %977 = vmatprep.subr.bf16.mxu0 %v1145_v27 }
 0x28d   : > { %978 = vmatpush3.bf16.msra.mxu0 %v1146_v28 }
 0x28e   : > { %979 = vmatprep.subr.bf16.mxu0 %v1147_v29 }
 0x291   : > { %980 = vmatpush3.bf16.msra.mxu0 %v1148_v30 }
 0x306   : > { %v483_v39 = vpop.xlane.xlu1 %482 }
 0x307   : > { %v484_v40 = vmul.f32 0.0078125, %v483_v39 }
 0x309   : > { %v1588_v41 = vsub.f32 %v1584_v35, %v484_v40 }
 0x30b   : > { %v486_v42 = vmul.f32 %v1588_v41, %v1588_v41 }
 0x30d   : > { %487 = vadd.xlane.f32.xlu1 %v486_v42 }
 0x396   : > { %v488_v8 = vpop.xlane.xlu1 %487 }
 0x397   : > { %v489_v9 = vmul.f32 0.007874016, %v488_v8 }
 0x399   : > { %1153 = vrsqrt.f32 %v489_v9  ;;  %vm492_vm3 = vcmp.eq.f32.partialorder %v489_v9, inf  ;;  %v495_v12 = vand.u32 2147483648, %v489_v9  ;;  %vm494_vm4 = vcmp.eq.f32.partialorder %v489_v9, 0.0 }
 0x3a6   : > { %v1154_v10 = vpop.eup %1153 }
 0x3a7   : > { %v491_v11 = vmul.f32 %v1154_v10, %v489_v9 }
 0x3a9   : > { %v493_v13 = vsel %vm492_vm3, %v489_v9, %v491_v11 }
 0x3aa   : > { %v496_v14 = vsel %vm494_vm4, %v495_v12, %v493_v13 }
 0x3ab   : > { %v497_v15 = vadd.f32 1e-06, %v496_v14 }
 0x3ad   : > { %1155 = vrcp.f32 %v497_v15 }
 0x3ba   : > { %v1156_v19 = vpop.eup %1155 }
 0x3bb   : > { %v499_v20 = vmul.f32 %v1156_v19, %v1588_v41 }
 0x3bd   : > { %v504_v22 = vmul.f32 %v503_v18, %v499_v20 }
 0x3bf   : > { %v509_v24 = vadd.f32 %v508_v21, %v504_v22 }
 0x3c1   : > { %v510_v26 = vpack.c.bf16 %v509_v24, %v509_v24 }
 0x3c3   : > { %624 = vmatmul.mubr.bf16.vlgmr.msra.gmra.mxu1 %v510_v26 }
 0x483   : > { %v625_v23 = vpop.f32.mrf.mxu1 }
 0x484   : > { %v632_v31 = vmax.f32 %v625_v23, 0.0 }
 0x485   : > { %v627_v32 = vpop.f32.mrf.mxu1 }
 0x486   : > { %v633_v33 = vmax.f32 %v627_v32, 0.0  ;;  %v634_v36 = vpack.c.bf16 %v632_v31, %v632_v31 }
 0x487   : > { %v629_v34 = vpop.f32.mrf.mxu1 }
 0x488   : > { %v635_v25 = vpack.c.bf16 %v633_v33, %v633_v33 }
 0x489   : > { %v630_v37 = vpop.f32.mrf.mxu1 }
 0x48a   : > { %764 = vmatprep.mubr.bf16.mxu0 %v635_v25 }
 0x48b   : > { %765 = vmatmul.mubr.bf16.vlgmr.msra.gmra.mxu0 %v634_v36 }
 0x54b   : > { %v981_v38 = vpop.f32.mrf.mxu0 }
 0x54d   : > { %v982_v39 = vpop.f32.mrf.mxu0 }
 0x54e   : > { %v983_v40 = vadd.f32 %v982_v39, %v981_v38 }
 0x54f   : > { %v984_v41 = vpop.f32.mrf.mxu0 }
 0x550   : > { %v772_v42 = vadd.f32 %v983_v40, %v1584_v35 }
 0x551   : > { %v985_v43 = vpop.f32.mrf.mxu0 }
 0x552   : > { %773 = vst [vmem:[%s295_s11] sm:$0xff] %v772_v42 }
 0x553   : > { %1302 = shalt.err (!%p1299_p11)
}
 0x554   : > { %s1303_s22 = scalar_lea.hbm %s1604_s6, 128  ;;  %s1307_s7 = scalar_lea.hbm %s1646_s5, 256 }
 0x555   : > { %p1304_p13 = scmp.ne.s32.totalorder %s1604_s6, %s1303_s22  ;;  %p1308_p4 = scmp.lt.s32.totalorder %s1604_s6, %s1646_s5 }
 0x556   : > { %p1309_p6 = scmp.lt.s32.totalorder %s1307_s7, %s1303_s22 }
 0x557   : > { %p1305_p1 = pnand %p1304_p13, %p1664_p7 }
 0x558   : > { %p1310_p5 = por %p1309_p6, %p1308_p4 }
 0x559   : > { %p1306_p3 = pneg %p1305_p1 }
 0x55b   : > { %p1311_p8 = pnand %p1310_p5, %p1306_p3 }
 0x55d   : > { %1314 = shalt.err (!%p1311_p8)
}
 0x55e   : > { %1025 = dma.vmem_to_hbm [thread:$0]  (%p1664_p7), %s789_s23, 128, %s1604_s6, %s775_s15  }
 0x55f PF: > { %s800_s25 = sand.u32 1, %s1349_s18   ;;  %p1665_p10 = scmp.ne.s32.totalorder %s1656_s14, 0 }
 0x560   : > { %p1666_p0 = scmp.ge.s32.totalorder %s1361_s21, 2  ;;  %s801_s11 = scalar_lea.sflag [#allocation4], %s800_s25 }
 0x562   : > { %p1045_p12 = pnand %p1666_p0, %p1665_p10 }
 0x564   : > { %p1046_p2 = pneg %p1045_p12 }
 0x566   : > { %1344 = dma.done.wait (%p1046_p2), %s801_s11, 128  }
 0x567   : > { %1346 = vsyncadd (%p1046_p2), %s801_s11, 4294967168  ;;  %p20_p9 = scmp.ge.s32.totalorder %s1495_s28, 4   ;;  %s1667_s18 = smov %s1353_s19 }
 0x568   : > { %s1668_s19 = smov %s1357_s20  ;;  %s1669_s20 = smov %s1506_s9 }
 0x569   : > { %s1670_s21 = smov %s1495_s28  ;;  %22 = sbr.rel (!%p20_p9) target bundleno = 7 (0x7), region = 101 }
 0x56e   :  { %806 = vsyncpa [#allocation3], 1 }
 0x56f   :  { %808 = vsyncpa [#allocation3 + $0x1], 1 }
 0x570   :  { %809 = vsyncpa [#allocation6], 1 }
 0x571   :  { %810 = vsyncpa [#allocation9], 1 }
 0x572   :  { %811 = vsyncpa [#allocation4], 1 }
 0x573   :  { %813 = vsyncpa [#allocation4 + $0x1], 1 }

// kernel: tpu_custom_call.1
= control target key start
LH: loop header
LB: loop body
LE: loop exit
PB: predicated region body
PF: predicated region fallthrough
CT: control target
= control target key end

     0   :  { %10 = vsyncpa [#allocation3], 0  ;;  %s1641_s0 = inlined_call_operand.hbm [shape: f32[16,128], index: 0, kind: input, shape index: {}]   ;;  %s1642_s1 = inlined_call_operand.hbm [shape: f32[4,128], index: 1, kind: input, shape index: {}]   ;;  %s1643_s2 = inlined_call_operand.hbm [shape: bf16[128,128], index: 2, kind: input, shape index: {}]   ;;  %s1644_s3 = inlined_call_operand.hbm [shape: bf16[128,256], index: 3, kind: input, shape index: {}]   ;;  %s1645_s4 = inlined_call_operand.hbm [shape: bf16[256,128], index: 4, kind: input, shape index: {}]   ;;  %s1646_s5 = inlined_call_operand.hbm [shape: f32[16,128], index: 5, kind: output, shape index: {}]  }
   0x1   :  { %12 = vsyncpa [#allocation3 + $0x1], 0 }
   0x2   :  { %13 = vsyncpa [#allocation6], 0 }
   0x3   :  { %14 = vsyncpa [#allocation9], 0 }
   0x4   :  { %15 = vsyncpa [#allocation4], 0 }
   0x5   :  { %17 = vsyncpa [#allocation4 + $0x1], 0  ;;  %s1406_s18 = smov 0   ;;  %s1408_s19 = smov 0  }
   0x6   :  { %s1410_s20 = smov 0   ;;  %s1412_s21 = smov 0  }
   0x7 LB: > { %s1363_s22 = smov [#allocation5]   ;;  %s1427_s24 = sadd.s32 4294967295, %s1361_s21   ;;  %s1361_s21 = sphi %s1412_s21, %s1670_s21   ;;  %s1357_s20 = sphi %s1410_s20, %s1669_s20   ;;  %s1353_s19 = sphi %s1408_s19, %s1668_s19   ;;  %s1349_s18 = sphi %s1406_s18, %s1667_s18  }
   0x8   : > { %s177_s23 = sshll.u32 %s1363_s22, 4  ;;  %p897_p0 = scmp.ge.s32.totalorder %s1361_s21, 1  ;;  %s178_s23 = int_to_ptr.vmem [resolvable:$true] %s177_s23 }
   0x9   : > { %p1647_p1 = scmp.eq.s32.totalorder %s1427_s24, 0  ;;  %p164_p2 = scmp.lt.s32.totalorder %s1361_s21, 3 }
   0xa   : > { %s1364_s26 = smov [#allocation8]   ;;  %s1365_s29 = smov [#allocation7]  }
   0xb   : > { %p1432_p3 = pnand %p897_p0, %p164_p2  ;;  %s200_s27 = sshll.u32 %s1364_s26, 4  ;;  %s1439_s27 = int_to_ptr.vmem [resolvable:$true] %s200_s27 }
   0xc   : > { %s187_s30 = sshll.u32 %s1365_s29, 4  ;;  %s1168_s6 = scalar_lea.vmem %s178_s23, 64  ;;  %s1447_s30 = int_to_ptr.vmem [resolvable:$true] %s187_s30 }
   0xd   : > { %s1651_s25 = scalar_select %p1432_p3, 1, 0 }
   0xe   : > { %p1027_p5 = pneg %p1432_p3  ;;  %p1169_p8 = scmp.ne.s32.totalorder %s178_s23, %s1168_s6 }
   0xf   : > { %p1176_p11 = scmp.lt.s32.totalorder %s178_s23, %s178_s23  ;;  %p1177_p12 = scmp.lt.s32.totalorder %s1168_s6, %s1168_s6 }
  0x10   : > { %p1443_p6 = pnand %p1027_p5, %p1647_p1 }
  0x11   : > { %p1178_p13 = por %p1177_p12, %p1176_p11 }
  0x12   : > { %p1159_p7 = pneg %p1443_p6 }
  0x14   : > { %p1171_p9 = pnand %p1169_p8, %p1159_p7 }
  0x16   : > { %p1172_p10 = pneg %p1171_p9 }
  0x18   : > { %p1179_p0 = pnand %p1178_p13, %p1172_p10 }
  0x1a   : > { %1182 = shalt.err (!%p1179_p0)
}
  0x1b   : > { %1030 = dma.hbm_to_vmem [thread:$0]  (!%p1443_p6), %s1642_s1, 64, %s178_s23, [#allocation6]  }
  0x1c   : > { %s1194_s9 = scalar_lea.vmem %s1439_s27, 2048  ;;  %p1202_p9 = scmp.lt.s32.totalorder %s1439_s27, %s1439_s27 }
  0x1d   : > { %p1195_p2 = scmp.ne.s32.totalorder %s1439_s27, %s1194_s9  ;;  %p1203_p10 = scmp.lt.s32.totalorder %s1194_s9, %s1194_s9 }
  0x1f   : > { %p1197_p5 = pnand %p1195_p2, %p1159_p7  ;;  %p1204_p11 = por %p1203_p10, %p1202_p9 }
  0x21   : > { %p1198_p8 = pneg %p1197_p5 }
  0x23   : > { %p1205_p12 = pnand %p1204_p11, %p1198_p8 }
  0x25   : > { %1208 = shalt.err (!%p1205_p12)
}
  0x26   : > { %s1366_s10 = smov 128   ;;  %s1367_s11 = smov 8  }
  0x27   : > { %1036 = dma.hbm_to_vmem [thread:$0]  (!%p1443_p6), %s1644_s3, 2048, %s1439_s27, [#allocation9], %s1366_s10, %s1366_s10, %s1367_s11  }
  0x28   : > { %s1220_s14 = scalar_lea.vmem %s1447_s30, 1024  ;;  %p1228_p5 = scmp.lt.s32.totalorder %s1447_s30, %s1447_s30 }
  0x29   : > { %p1221_p13 = scmp.ne.s32.totalorder %s1447_s30, %s1220_s14  ;;  %p1229_p8 = scmp.lt.s32.totalorder %s1220_s14, %s1220_s14 }
  0x2b   : > { %p1223_p0 = pnand %p1221_p13, %p1159_p7  ;;  %p1230_p9 = por %p1229_p8, %p1228_p5 }
  0x2d   : > { %p1224_p2 = pneg %p1223_p0 }
  0x2f   : > { %p1231_p10 = pnand %p1230_p9, %p1224_p2 }
  0x31   : > { %1234 = shalt.err (!%p1231_p10)
}
  0x32   : > { %s1368_s15 = smov 64   ;;  %s1369_s16 = smov 4  }
  0x33   : > { %1033 = dma.hbm_to_vmem [thread:$0]  (!%p1443_p6), %s1643_s2, 1024, %s1447_s30, [#allocation6], %s1368_s15, %s1368_s15, %s1369_s16  }
  0x34   : > { %s1370_s23 = smov [#allocation10]  }
  0x35   : > { %s213_s26 = sshll.u32 %s1370_s23, 4  ;;  %s214_s26 = int_to_ptr.vmem [resolvable:$true] %s213_s26 }
  0x36   : > { %s1246_s27 = scalar_lea.vmem %s214_s26, 2048  ;;  %p1254_p0 = scmp.lt.s32.totalorder %s214_s26, %s214_s26 }
  0x37   : > { %p1247_p11 = scmp.ne.s32.totalorder %s214_s26, %s1246_s27  ;;  %p1255_p2 = scmp.lt.s32.totalorder %s1246_s27, %s1246_s27 }
  0x39   : > { %p1249_p12 = pnand %p1247_p11, %p1159_p7  ;;  %p1256_p5 = por %p1255_p2, %p1254_p0 }
  0x3b   : > { %p1250_p13 = pneg %p1249_p12 }
  0x3d   : > { %p1257_p8 = pnand %p1256_p5, %p1250_p13 }
  0x3f   : > { %1260 = shalt.err (!%p1257_p8)
}
  0x40   : > { %1039 = dma.hbm_to_vmem [thread:$0]  (!%p1443_p6), %s1645_s4, 2048, %s214_s26, [#allocation9], %s1368_s15, %s1368_s15, %s1369_s16  }
  0x41   : > { %s896_s30 = sadd.s32 4294967294, %s1361_s21   ;;  %s1495_s28 = sadd.s32 1, %s1361_s21  }
  0x42   : > { %s27_s7 = ssub.s32 %s1361_s21, %s1495_s28  ;;  %s30_s8 = sadd.s32 1, %s1357_s20 }
  0x43   : > { %p28_p7 = scmp.eq.s32.totalorder %s27_s7, 0  ;;  %p37_p9 = scmp.ne.s32.totalorder %s1357_s20, %s1353_s19 }
  0x44   : > { %p38_p10 = scmp.eq.s32.totalorder %s1361_s21, 0  ;;  %p43_p11 = scmp.ne.s32.totalorder %s1353_s19, %s1349_s18 }
  0x45   : > { %s1506_s9 = scalar_select %p28_p7, %s1357_s20, %s30_s8  }
  0x46   : > { %p1508_p12 = por %p38_p10, %p37_p9  ;;  %p1514_p6 = por %p1647_p1, %p43_p11 }
  0x47   : > { %p151_p13 = scmp.eq.s32.totalorder %s1427_s24, 1  ;;  %p157_p0 = scmp.eq.s32.totalorder %s896_s30, 1 }
  0x48   : > { %s1654_s11 = scalar_select %p1514_p6, 1, 0 }
  0x49   : > { %p1052_p2 = scmp.lt.s32.totalorder %s1361_s21, 2  ;;  %s227_s12 = sand.u32 1, %s1357_s20  }
  0x4a   : > { %p1521_p5 = por %p151_p13, %p37_p9  ;;  %p1525_p8 = por %p157_p0, %p43_p11 }
  0x4b   : > { %s903_s15 = sshll.u32 %s227_s12, 3  ;;  %s904_s16 = sshll.u32 %s1361_s21, 7 }
  0x4c   : > { %s1655_s13 = scalar_select %p1521_p5, 1, 0 }
  0x4d   : > { %s1656_s14 = scalar_select %p1525_p8, 1, 0 }
  0x4e   : > { %s1533_s23 = scalar_lea.hbm %s1641_s0, %s904_s16  ;;  %s231_s26 = scalar_lea.vmem [#allocation2], %s903_s15 }
  0x4f   : > { %s238_s27 = sshll.u32 %s231_s26, 4  ;;  %p1537_p7 = pnand %p1052_p2, %p1508_p12  ;;  %s239_s27 = int_to_ptr.vmem [resolvable:$true] %s238_s27 }
  0x50   : > { %s228_s6 = scalar_lea.sflag [#allocation3], %s227_s12  ;;  %s1261_s30 = scalar_lea.hbm %s1533_s23, 128 }
  0x51   : > { %p1262_p9 = scmp.ne.s32.totalorder %s1533_s23, %s1261_s30  ;;  %p1263_p10 = pneg %p1537_p7 }
  0x52   : > { %s1266_s16 = scalar_lea.hbm %s1641_s0, 256  ;;  %p1267_p0 = scmp.lt.s32.totalorder %s1533_s23, %s1641_s0 }
  0x53   : > { %p1264_p11 = pnand %p1263_p10, %p1262_p9  ;;  %p1268_p12 = scmp.lt.s32.totalorder %s1266_s16, %s1261_s30 }
  0x55   : > { %p1265_p13 = pneg %p1264_p11  ;;  %p1269_p2 = por %p1268_p12, %p1267_p0 }
  0x57   : > { %p1270_p4 = pnand %p1269_p2, %p1265_p13 }
  0x59   : > { %1273 = shalt.err (!%p1270_p4)
}
  0x5a   : > { %s1274_s10 = scalar_lea.vmem %s239_s27, 128  ;;  %s1371_s12 = smov [#allocation2]  }
  0x5b   : > { %p1275_p1 = scmp.ne.s32.totalorder %s239_s27, %s1274_s10  ;;  %s1279_s22 = sshll.u32 %s1371_s12, 4  ;;  %s1280_s22 = int_to_ptr.vmem [resolvable:$false] %s1279_s22 }
  0x5c   : > { %s1281_s26 = scalar_lea.vmem %s1280_s22, 256  ;;  %p1282_p9 = scmp.lt.s32.totalorder %s239_s27, %s1280_s22 }
  0x5d   : > { %p1277_p8 = pnand %p1275_p1, %p1263_p10  ;;  %p1283_p11 = scmp.lt.s32.totalorder %s1281_s26, %s1274_s10 }
  0x5f   : > { %p1278_p5 = pneg %p1277_p8  ;;  %p1284_p6 = por %p1283_p11, %p1282_p9 }
  0x61   : > { %p1285_p3 = pnand %p1284_p6, %p1278_p5 }
  0x63   : > { %1288 = shalt.err (!%p1285_p3)
}
  0x64   : > { %1043 = dma.hbm_to_vmem [thread:$0]  (!%p1537_p7), %s1533_s23, 128, %s239_s27, %s228_s6  }
  0x65   : > { %p1658_p13 = scmp.ne.s32.totalorder %s1651_s25, 0 }
  0x66   : > { %s1558_s30 = sand.u32 (!%p1658_p13), 1, %s1353_s19   ;;  %p1659_p1 = scmp.ne.s32.totalorder (!%p1658_p13), %s1654_s11, 0 }
  0x67   : > { %247 = sbr.rel (%p1658_p13) target bundleno = 1375 (0x55f), region = 40  ;;  %s906_s7 = sshll.u32 (!%p1658_p13), %s1558_s30, 3 }
  0x68   : > { %s250_s8 = scalar_lea.sflag (!%p1658_p13), [#allocation3], %s1558_s30  ;;  %s253_s16 = scalar_lea.vmem (!%p1658_p13), [#allocation2], %s906_s7 }
  0x6c   : > { %1332 = dma.done.wait (%p1659_p1), %s250_s8, 128  }
  0x6d   : > { %1334 = vsyncadd (%p1659_p1), %s250_s8, 4294967168  ;;  %p1660_p3 = scmp.eq.s32.totalorder %s1427_s24, 0 }
  0x6f   : > { %1336 = dma.done.wait (%p1660_p3), [#allocation6], 1088   ;;  %p1661_p4 = pmov %p1660_p3 }
  0x70   : > { %p1662_p6 = pmov %p1660_p3 }
  0x71   : > { %1338 = vsyncadd (%p1661_p4), [#allocation6], 4294966208 }
  0x72   : > { %1340 = dma.done.wait (%p1662_p6), [#allocation9], 4096   ;;  %p1663_p5 = pmov %p1660_p3 }
  0x73   : > { %v362_v0 = vld [vmem:[%s253_s16] sm:$0xff]  ;;  %v1372_v6 = vmov 0.0   ;;  %v1104_v9 = vld [vmem:[#allocation7 + $0x20] sm:$0xff]   ;;  %vm1373_vm0 = vmmov 0   ;;  %v382_v22 = vlaneseq  ;;  %v1579_v25 = vld [vmem:[#allocation5] sm:$0xf] }
  0x74   : > { %1342 = vsyncadd (%p1663_p5), [#allocation9], 4294963200  ;;  %363 = vadd.xlane.f32.xlu0 %v362_v0  ;;  %v1101_v5 = vld [vmem:[#allocation7 + $0x38] sm:$0xff]   ;;  %987 = vmatprep.subr.bf16.mxu0 %v1372_v6  ;;  %v1102_v7 = vld [vmem:[#allocation7 + $0x30] sm:$0xff]   ;;  %v1374_v54 = vmov 0   ;;  %s953_s25 = sshll.u32 %s1427_s24, 7 }
  0x75   : > { %988 = vmatpush3.bf16.msra.mxu0 %v1101_v5  ;;  %v1103_v8 = vld [vmem:[#allocation7 + $0x28] sm:$0xff]   ;;  %1003 = vmatprep.mubr.msk.bf16.mxu0 %vm1373_vm0, %v1372_v6  ;;  %v1105_v10 = vld [vmem:[#allocation7 + $0x18] sm:$0xff]   ;;  %v1106_v11 = vld [vmem:[#allocation7 + $0x10] sm:$0xff]   ;;  %v1576_v23 = vshrl.u32 %v382_v22, 7  ;;  %s295_s11 = scalar_lea.vmem [#allocation11], %s906_s7  ;;  %s1604_s6 = scalar_lea.hbm %s1646_s5, %s953_s25 }
  0x76   : > { %989 = vmatprep.subr.bf16.mxu0 %v1372_v6  ;;  %v1107_v12 = vld [vmem:[#allocation7 + $0x8] sm:$0xff]   ;;  %v1108_v13 = vld [vmem:[#allocation7] sm:$0xff]   ;;  %v1109_v43 = vld [vmem:[#allocation8 + $0x74] ss:$8 sps:$4 sm:$0xff]   ;;  %623 = vmatprep.mubr.bf16.mxu1 %v1374_v54  ;;  %s788_s23 = sshll.u32 %s295_s11, 4  ;;  %s775_s15 = scalar_lea.sflag [#allocation4], %s1558_s30  ;;  %s789_s23 = int_to_ptr.vmem [resolvable:$true] %s788_s23 }
  0x77   : > { %v384_v24 = vsub.s32 0, %v1576_v23  ;;  %v389_v26 = vsub.s32 1, %v1576_v23  ;;  %v1111_v44 = vld [vmem:[#allocation8 + $0x70] ss:$8 sps:$4 sm:$0xff]   ;;  %591 = vmatprep.subr.bf16.mxu1 %v1109_v43  ;;  %v1112_v45 = vld [vmem:[#allocation8 + $0x64] ss:$8 sps:$4 sm:$0xff]  }
  0x78   : > { %592 = vmatpush1.bf16.msra.mxu1 %v1111_v44  ;;  %v1114_v46 = vld [vmem:[#allocation8 + $0x60] ss:$8 sps:$4 sm:$0xff]   ;;  %v1115_v47 = vld [vmem:[#allocation8 + $0x54] ss:$8 sps:$4 sm:$0xff]   ;;  %v1117_v48 = vld [vmem:[#allocation8 + $0x50] ss:$8 sps:$4 sm:$0xff]  }
  0x79   : > { %990 = vmatpush3.bf16.msra.mxu0 %v1102_v7  ;;  %v385_v27 = vrot.slane %v1579_v25, %v384_v24  ;;  %v390_v30 = vrot.slane %v1579_v25, %v389_v26  ;;  %593 = vmatprep.subr.bf16.mxu1 %v1112_v45  ;;  %v1118_v49 = vld [vmem:[#allocation8 + $0x44] ss:$8 sps:$4 sm:$0xff]   ;;  %v1120_v50 = vld [vmem:[#allocation8 + $0x40] ss:$8 sps:$4 sm:$0xff]   ;;  %v1121_v51 = vld [vmem:[#allocation8 + $0x34] ss:$8 sps:$4 sm:$0xff]  }
  0x7a   : > { %991 = vmatprep.subr.bf16.mxu0 %v1372_v6  ;;  %v1123_v52 = vld [vmem:[#allocation8 + $0x30] ss:$8 sps:$4 sm:$0xff]   ;;  %v1124_v53 = vld [vmem:[#allocation8 + $0x24] ss:$8 sps:$4 sm:$0xff]   ;;  %v1126_v55 = vld [vmem:[#allocation8 + $0x20] ss:$8 sps:$4 sm:$0xff]  }
  0x7b   : > { %v1127_v56 = vld [vmem:[#allocation8 + $0x14] ss:$8 sps:$4 sm:$0xff]   ;;  %v1129_v57 = vld [vmem:[#allocation8 + $0x10] ss:$8 sps:$4 sm:$0xff]   ;;  %v1130_v58 = vld [vmem:[#allocation8 + $0x4] ss:$8 sps:$4 sm:$0xff]  }
  0x7c   : > { %594 = vmatpush1.bf16.msra.mxu1 %v1114_v46  ;;  %v1132_v59 = vld [vmem:[#allocation8] ss:$8 sps:$4 sm:$0xff]   ;;  %v1133_v60 = vld [vmem:[#allocation10 + $0x78] sm:$0xff]   ;;  %v1135_v62 = vld [vmem:[#allocation10 + $0x70] sm:$0xff]   ;;  %s1289_s17 = scalar_lea.vmem %s789_s23, 128  ;;  %p1664_p7 = scmp.ne.s32.totalorder %s1655_s13, 0 }
  0x7d   : > { %992 = vmatpush3.bf16.msra.mxu0 %v1103_v8  ;;  %595 = vmatprep.subr.bf16.mxu1 %v1115_v47  ;;  %v1134_v61 = vld [vmem:[#allocation10 + $0x38] sm:$0xff]   ;;  %v1136_v63 = vld [vmem:[#allocation10 + $0x30] sm:$0xff]   ;;  %p1290_p8 = scmp.ne.s32.totalorder %s789_s23, %s1289_s17  ;;  %s1375_s24 = smov [#allocation11]  }
  0x7e   : > { %993 = vmatprep.subr.bf16.mxu0 %v1372_v6  ;;  %v1142_v5 = vld [vmem:[#allocation10 + $0x18] sm:$0xff]   ;;  %v1144_v7 = vld [vmem:[#allocation10 + $0x10] sm:$0xff]   ;;  %s1293_s10 = sshll.u32 %s1375_s24, 4  ;;  %s1294_s10 = int_to_ptr.vmem [resolvable:$false] %s1293_s10 }
  0x7f   : > { %p1291_p10 = pnand %p1290_p8, %p1664_p7  ;;  %s1295_s12 = scalar_lea.vmem %s1294_s10, 256 }
  0x80   : > { %596 = vmatpush1.bf16.msra.mxu1 %v1117_v48  ;;  %p1296_p12 = scmp.lt.s32.totalorder %s789_s23, %s1294_s10  ;;  %p1297_p2 = scmp.lt.s32.totalorder %s1295_s12, %s1289_s17 }
  0x81   : > { %994 = vmatpush3.bf16.msra.mxu0 %v1104_v9  ;;  %597 = vmatprep.subr.bf16.mxu1 %v1118_v49  ;;  %p1292_p0 = pneg %p1291_p10 }
  0x82   : > { %995 = vmatprep.subr.bf16.mxu0 %v1372_v6  ;;  %p1298_p9 = por %p1297_p2, %p1296_p12 }
  0x84   : > { %598 = vmatpush1.bf16.msra.mxu1 %v1120_v50  ;;  %p1299_p11 = pnand %p1298_p9, %p1292_p0 }
  0x85   : > { %996 = vmatpush3.bf16.msra.mxu0 %v1105_v10  ;;  %599 = vmatprep.subr.bf16.mxu1 %v1121_v51 }
  0x86   : > { %997 = vmatprep.subr.bf16.mxu0 %v1372_v6 }
  0x88   : > { %600 = vmatpush1.bf16.msra.mxu1 %v1123_v52 }
  0x89   : > { %998 = vmatpush3.bf16.msra.mxu0 %v1106_v11  ;;  %601 = vmatprep.subr.bf16.mxu1 %v1124_v53 }
  0x8a   : > { %999 = vmatprep.subr.bf16.mxu0 %v1372_v6 }
  0x8c   : > { %602 = vmatpush1.bf16.msra.mxu1 %v1126_v55 }
  0x8d   : > { %1000 = vmatpush3.bf16.msra.mxu0 %v1107_v12  ;;  %603 = vmatprep.subr.bf16.mxu1 %v1127_v56 }
  0x8e   : > { %1001 = vmatprep.subr.bf16.mxu0 %v1372_v6  ;;  %v1143_v6 = vld [vmem:[#allocation10 + $0x50] sm:$0xff]  }
  0x90   : > { %604 = vmatpush1.bf16.msra.mxu1 %v1129_v57 }
  0x91   : > { %1002 = vmatpush3.bf16.msra.mxu0 %v1108_v13  ;;  %605 = vmatprep.subr.bf16.mxu1 %v1130_v58 }
  0x92   : > { %965 = vmatprep.subr.bf16.mxu0 %v1133_v60 }
  0x94   : > { %606 = vmatpush1.bf16.msra.mxu1 %v1132_v59 }
  0xfd   : > { %v364_v1 = vpop.xlane.xlu0 %363 }
  0xfe   : > { %v366_v2 = vmul.f32 0.0078125, %v364_v1  ;;  %v1138_v1 = vld [vmem:[#allocation10 + $0x28] sm:$0xff]  }
 0x100   : > { %v367_v3 = vsub.f32 %v362_v0, %v366_v2  ;;  %v1139_v2 = vld [vmem:[#allocation10 + $0x60] sm:$0xff]  }
 0x102   : > { %v368_v4 = vmul.f32 %v367_v3, %v367_v3 }
 0x104   : > { %369 = vadd.xlane.f32.xlu0 %v368_v4  ;;  %v1141_v4 = vld [vmem:[#allocation10 + $0x58] sm:$0xff]  }
 0x18d   : > { %v370_v14 = vpop.xlane.xlu0 %369 }
 0x18e   : > { %v371_v15 = vmul.f32 0.007874016, %v370_v14 }
 0x190   : > { %1149 = vrsqrt.f32 %v371_v15  ;;  %vm374_vm1 = vcmp.eq.f32.partialorder %v371_v15, inf  ;;  %v377_v18 = vand.u32 2147483648, %v371_v15  ;;  %vm376_vm2 = vcmp.eq.f32.partialorder %v371_v15, 0.0 }
 0x19d   : > { %v1150_v16 = vpop.eup %1149 }
 0x19e   : > { %v373_v17 = vmul.f32 %v1150_v16, %v371_v15  ;;  %v502_v16 = vsub.s32 2, %v1576_v23 }
 0x1a0   : > { %v375_v19 = vsel %vm374_vm1, %v371_v15, %v373_v17  ;;  %v507_v17 = vsub.s32 3, %v1576_v23 }
 0x1a1   : > { %v378_v20 = vsel %vm376_vm2, %v377_v18, %v375_v19  ;;  %v503_v18 = vrot.slane %v1579_v25, %v502_v16 }
 0x1a2   : > { %v379_v21 = vadd.f32 1e-06, %v378_v20 }
 0x1a4   : > { %1151 = vrcp.f32 %v379_v21  ;;  %v508_v21 = vrot.slane %v1579_v25, %v507_v17 }
 0x1b1   : > { %v1152_v28 = vpop.eup %1151 }
 0x1b2   : > { %v381_v29 = vmul.f32 %v1152_v28, %v367_v3  ;;  %v1140_v3 = vld [vmem:[#allocation10 + $0x20] sm:$0xff]   ;;  %v1146_v28 = vld [vmem:[#allocation10 + $0x8] sm:$0xff]  }
 0x1b4   : > { %v386_v31 = vmul.f32 %v385_v27, %v381_v29  ;;  %v1145_v27 = vld [vmem:[#allocation10 + $0x48] sm:$0xff]   ;;  %v1147_v29 = vld [vmem:[#allocation10 + $0x40] sm:$0xff]  }
 0x1b6   : > { %v391_v32 = vadd.f32 %v390_v30, %v386_v31  ;;  %v1148_v30 = vld [vmem:[#allocation10] sm:$0xff]  }
 0x1b8   : > { %v392_v33 = vpack.c.bf16 %v391_v32, %v391_v32 }
 0x1ba   : > { %1004 = vmatmul.mubr.bf16.vlgmr.msra.gmra.mxu0 %v392_v33 }
 0x1bb   : > { %966 = vmatpush3.bf16.msra.mxu0 %v1134_v61 }
 0x1bc   : > { %967 = vmatprep.subr.bf16.mxu0 %v1135_v62 }
 0x1bf   : > { %968 = vmatpush3.bf16.msra.mxu0 %v1136_v63 }
 0x27a   : > { %v475_v34 = vpop.f32.mrf.mxu0 }
 0x27b   : > { %v1584_v35 = vadd.f32 %v475_v34, %v362_v0  ;;  %v1137_v0 = vld [vmem:[#allocation10 + $0x68] sm:$0xff]  }
 0x27c   : > { %v1005_v36 = vpop.f32.mrf.mxu0  ;;  %969 = vmatprep.subr.bf16.mxu0 %v1137_v0 }
 0x27d   : > { %482 = vadd.xlane.f32.xlu1 %v1584_v35  ;;  %970 = vmatpush3.bf16.msra.mxu0 %v1138_v1 }
 0x27e   : > { %v478_v37 = vpop.f32.mrf.mxu0  ;;  %971 = vmatprep.subr.bf16.mxu0 %v1139_v2 }
 0x280   : > { %v1006_v38 = vpop.f32.mrf.mxu0 }
 0x281   : > { %972 = vmatpush3.bf16.msra.mxu0 %v1140_v3 }
 0x282   : > { %973 = vmatprep.subr.bf16.mxu0 %v1141_v4 }
 0x285   : > { %974 = vmatpush3.bf16.msra.mxu0 %v1142_v5 }
 0x286   : > { %975 = vmatprep.subr.bf16.mxu0 %v1143_v6 }
 0x289   : > { %976 = vmatpush3.bf16.msra.mxu0 %v1144_v7 }
 0x28a   : > { %977 = vmatprep.subr.bf16.mxu0 %v1145_v27 }
 0x28d   : > { %978 = vmatpush3.bf16.msra.mxu0 %v1146_v28 }
 0x28e   : > { %979 = vmatprep.subr.bf16.mxu0 %v1147_v29 }
 0x291   : > { %980 = vmatpush3.bf16.msra.mxu0 %v1148_v30 }
 0x306   : > { %v483_v39 = vpop.xlane.xlu1 %482 }
 0x307   : > { %v484_v40 = vmul.f32 0.0078125, %v483_v39 }
 0x309   : > { %v1588_v41 = vsub.f32 %v1584_v35, %v484_v40 }
 0x30b   : > { %v486_v42 = vmul.f32 %v1588_v41, %v1588_v41 }
 0x30d   : > { %487 = vadd.xlane.f32.xlu1 %v486_v42 }
 0x396   : > { %v488_v8 = vpop.xlane.xlu1 %487 }
 0x397   : > { %v489_v9 = vmul.f32 0.007874016, %v488_v8 }
 0x399   : > { %1153 = vrsqrt.f32 %v489_v9  ;;  %vm492_vm3 = vcmp.eq.f32.partialorder %v489_v9, inf  ;;  %v495_v12 = vand.u32 2147483648, %v489_v9  ;;  %vm494_vm4 = vcmp.eq.f32.partialorder %v489_v9, 0.0 }
 0x3a6   : > { %v1154_v10 = vpop.eup %1153 }
 0x3a7   : > { %v491_v11 = vmul.f32 %v1154_v10, %v489_v9 }
 0x3a9   : > { %v493_v13 = vsel %vm492_vm3, %v489_v9, %v491_v11 }
 0x3aa   : > { %v496_v14 = vsel %vm494_vm4, %v495_v12, %v493_v13 }
 0x3ab   : > { %v497_v15 = vadd.f32 1e-06, %v496_v14 }
 0x3ad   : > { %1155 = vrcp.f32 %v497_v15 }
 0x3ba   : > { %v1156_v19 = vpop.eup %1155 }
 0x3bb   : > { %v499_v20 = vmul.f32 %v1156_v19, %v1588_v41 }
 0x3bd   : > { %v504_v22 = vmul.f32 %v503_v18, %v499_v20 }
 0x3bf   : > { %v509_v24 = vadd.f32 %v508_v21, %v504_v22 }
 0x3c1   : > { %v510_v26 = vpack.c.bf16 %v509_v24, %v509_v24 }
 0x3c3   : > { %624 = vmatmul.mubr.bf16.vlgmr.msra.gmra.mxu1 %v510_v26 }
 0x483   : > { %v625_v23 = vpop.f32.mrf.mxu1 }
 0x484   : > { %v632_v31 = vmax.f32 %v625_v23, 0.0 }
 0x485   : > { %v627_v32 = vpop.f32.mrf.mxu1 }
 0x486   : > { %v633_v33 = vmax.f32 %v627_v32, 0.0  ;;  %v634_v36 = vpack.c.bf16 %v632_v31, %v632_v31 }
 0x487   : > { %v629_v34 = vpop.f32.mrf.mxu1 }
 0x488   : > { %v635_v25 = vpack.c.bf16 %v633_v33, %v633_v33 }
 0x489   : > { %v630_v37 = vpop.f32.mrf.mxu1 }
 0x48a   : > { %764 = vmatprep.mubr.bf16.mxu0 %v635_v25 }
 0x48b   : > { %765 = vmatmul.mubr.bf16.vlgmr.msra.gmra.mxu0 %v634_v36 }
 0x54b   : > { %v981_v38 = vpop.f32.mrf.mxu0 }
 0x54d   : > { %v982_v39 = vpop.f32.mrf.mxu0 }
 0x54e   : > { %v983_v40 = vadd.f32 %v982_v39, %v981_v38 }
 0x54f   : > { %v984_v41 = vpop.f32.mrf.mxu0 }
 0x550   : > { %v772_v42 = vadd.f32 %v983_v40, %v1584_v35 }
 0x551   : > { %v985_v43 = vpop.f32.mrf.mxu0 }
 0x552   : > { %773 = vst [vmem:[%s295_s11] sm:$0xff] %v772_v42 }
 0x553   : > { %1302 = shalt.err (!%p1299_p11)
}
 0x554   : > { %s1303_s22 = scalar_lea.hbm %s1604_s6, 128  ;;  %s1307_s7 = scalar_lea.hbm %s1646_s5, 256 }
 0x555   : > { %p1304_p13 = scmp.ne.s32.totalorder %s1604_s6, %s1303_s22  ;;  %p1308_p4 = scmp.lt.s32.totalorder %s1604_s6, %s1646_s5 }
 0x556   : > { %p1309_p6 = scmp.lt.s32.totalorder %s1307_s7, %s1303_s22 }
 0x557   : > { %p1305_p1 = pnand %p1304_p13, %p1664_p7 }
 0x558   : > { %p1310_p5 = por %p1309_p6, %p1308_p4 }
 0x559   : > { %p1306_p3 = pneg %p1305_p1 }
 0x55b   : > { %p1311_p8 = pnand %p1310_p5, %p1306_p3 }
 0x55d   : > { %1314 = shalt.err (!%p1311_p8)
}
 0x55e   : > { %1025 = dma.vmem_to_hbm [thread:$0]  (%p1664_p7), %s789_s23, 128, %s1604_s6, %s775_s15  }
 0x55f PF: > { %s800_s25 = sand.u32 1, %s1349_s18   ;;  %p1665_p10 = scmp.ne.s32.totalorder %s1656_s14, 0 }
 0x560   : > { %p1666_p0 = scmp.ge.s32.totalorder %s1361_s21, 2  ;;  %s801_s11 = scalar_lea.sflag [#allocation4], %s800_s25 }
 0x562   : > { %p1045_p12 = pnand %p1666_p0, %p1665_p10 }
 0x564   : > { %p1046_p2 = pneg %p1045_p12 }
 0x566   : > { %1344 = dma.done.wait (%p1046_p2), %s801_s11, 128  }
 0x567   : > { %1346 = vsyncadd (%p1046_p2), %s801_s11, 4294967168  ;;  %p20_p9 = scmp.ge.s32.totalorder %s1495_s28, 4   ;;  %s1667_s18 = smov %s1353_s19 }
 0x568   : > { %s1668_s19 = smov %s1357_s20  ;;  %s1669_s20 = smov %s1506_s9 }
 0x569   : > { %s1670_s21 = smov %s1495_s28  ;;  %22 = sbr.rel (!%p20_p9) target bundleno = 7 (0x7), region = 101 }
 0x56e   :  { %806 = vsyncpa [#allocation3], 1 }
 0x56f   :  { %808 = vsyncpa [#allocation3 + $0x1], 1 }
 0x570   :  { %809 = vsyncpa [#allocation6], 1 }
 0x571   :  { %810 = vsyncpa [#allocation9], 1 }
 0x572   :  { %811 = vsyncpa [#allocation4], 1 }
 0x573   :  { %813 = vsyncpa [#allocation4 + $0x1], 1 }

</bundles_post_ra>
